<compile_context>
chip_gen: v7x
topology: tpu7x:2x2x1
jax: 0.10.0
libtpu: 0.0.40
codegen_flags: <defaults>
</compile_context>

<pallas_src>
import jax
import jax.numpy as jnp
from jax.experimental import pallas as pl
from jax.experimental.pallas import tpu as pltpu

# ---- small DistilBERT-like config (synthetic, deterministic init) ----
VOCAB, MAX_POS = 100, 16
BATCH, SEQ = 2, 8
HIDDEN, HEADS, LAYERS, FFN = 64, 4, 2, 128
HEAD_DIM = HIDDEN // HEADS
NUM_CLASSES = 2
CLS_PAD = 128            # lane-dense classifier output width (>=128)
B_PAD = 8                # sublane-padded classifier output rows (>= BATCH, mult of 8)
LN_EPS = 1e-12
NEG_INF = -1e30          # additive mask value (finite: avoids inf-inf NaN)

_VMEM = pl.BlockSpec(memory_space=pltpu.MemorySpace.VMEM)


# ----------------------------- in-kernel helpers -----------------------------
def _bf16(x):
    return x.astype(jnp.bfloat16)


def _layernorm(x, g, b):
    mu = jnp.mean(x, axis=-1, keepdims=True)
    xc = x - mu                                      # computed once, reused
    var = jnp.mean(xc * xc, axis=-1, keepdims=True)
    return xc * jax.lax.rsqrt(var + LN_EPS) * g + b


def _gelu(x):
    # TODO(synk): tanh-approx GELU; HF DistilBERT uses exact erf-GELU (~1e-3 diff).
    c = 0.7978845608028654
    return 0.5 * x * (1.0 + jnp.tanh(c * (x + 0.044715 * x * x * x)))


# ------------------------------ fused kernel ---------------------------------
def _distilbert_kernel(
    x_ref, mask_ref,
    emb_g_ref, emb_b_ref,
    wqkv_ref, bqkv_ref, wo_ref, bo_ref, ln1_g_ref, ln1_b_ref,
    w1_ref, b1_ref, w2_ref, b2_ref, ln2_g_ref, ln2_b_ref,
    wcls_ref, bcls_ref,
    out_ref,
):
    B, S = mask_ref.shape
    T, H = x_ref.shape
    Dh = H // HEADS
    L = wqkv_ref.shape[0]

    # additive attention mask, hoisted out of the layer/head loops: [B, 1, S]
    mask3 = mask_ref[...][:, None, :]

    # embedding LayerNorm (embedding dropout is identity at inference)
    x = _layernorm(x_ref[...].astype(jnp.float32), emb_g_ref[...], emb_b_ref[...])

    for l in range(L):                      # static unroll (L = 2)
        # hoist every per-layer parameter read to a single load per layer
        wqkv_l, bqkv_l = wqkv_ref[l], bqkv_ref[l]      # [H,3H] bf16 (Q pre-scaled)
        wo_l, bo_l = wo_ref[l], bo_ref[l]              # [H,H] bf16
        ln1_g, ln1_b = ln1_g_ref[l], ln1_b_ref[l]
        w1_l, b1_l = w1_ref[l], b1_ref[l]
        w2_l, b2_l = w2_ref[l], b2_ref[l]
        ln2_g, ln2_b = ln2_g_ref[l], ln2_b_ref[l]

        # ---- fused QKV projection: one MXU pass, bf16 operands, f32 acc ----
        qkv = jnp.dot(_bf16(x), wqkv_l, preferred_element_type=jnp.float32)
        qkv = (qkv + bqkv_l).reshape(B, S, 3 * H)

        # ---- multi-head attention (per-head static loop, post-normalized) ----
        ctx_heads = []
        for h in range(HEADS):              # static unroll (HEADS = 4)
            q_h = _bf16(qkv[:, :, h * Dh:(h + 1) * Dh])                 # [B,S,Dh]
            k_h = _bf16(qkv[:, :, H + h * Dh: H + (h + 1) * Dh])
            v_h = _bf16(qkv[:, :, 2 * H + h * Dh: 2 * H + (h + 1) * Dh])

            s = jnp.einsum("bqd,bkd->bqk", q_h, k_h,
                           preferred_element_type=jnp.float32)
            s = s + mask3                                               # additive mask
            p = jnp.exp(s - jnp.max(s, axis=-1, keepdims=True))
            # NOTE: assumes no query row is fully masked (denominator > 0).
            # Normalize AFTER PV: EUP reciprocal overlaps the MXU matmul and
            # scales a [B,S,Dh] tensor instead of [B,S,S].
            inv_l = pl.reciprocal(jnp.sum(p, axis=-1, keepdims=True), approx=True)
            ctx_h = jnp.einsum("bqk,bkd->bqd", _bf16(p), v_h,
                               preferred_element_type=jnp.float32)
            ctx_heads.append(ctx_h * inv_l)

        # merge heads into contiguous lane ranges of [T, H] -> ONE K=H Wo matmul
        ctx = jnp.concatenate(ctx_heads, axis=-1).reshape(T, H)
        attn = jnp.dot(_bf16(ctx), wo_l, preferred_element_type=jnp.float32) + bo_l

        x = _layernorm(x + attn, ln1_g, ln1_b)

        # ---- FFN (GELU fused), bf16 operands, f32 accumulation ----
        h1 = _gelu(jnp.dot(_bf16(x), w1_l,
                           preferred_element_type=jnp.float32) + b1_l)
        h2 = jnp.dot(_bf16(h1), w2_l,
                     preferred_element_type=jnp.float32) + b2_l
        x = _layernorm(x + h2, ln2_g, ln2_b)

    # ---- classifier on the [CLS] rows only, lane-dense 128-wide output ----
    # (dropout before the classifier is identity at inference; the 2 real
    #  logits are sliced out of the 128-wide padded output in the wrapper.)
    cls = x.reshape(B, S, H)[:, 0, :]                                   # [B, H]
    logits = (jnp.dot(_bf16(cls), wcls_ref[...],
                      preferred_element_type=jnp.float32) + bcls_ref[...])
    pad_rows = out_ref.shape[0] - B
    if pad_rows:
        logits = jnp.concatenate(
            [logits, jnp.zeros((pad_rows, logits.shape[-1]), jnp.float32)], axis=0)
    out_ref[...] = logits.astype(out_ref.dtype)


# ------------------------------ parameters -----------------------------------
def init_params(key):
    std = 0.02
    ks = jax.random.split(key, 9)

    def norm(k, shape):
        return std * jax.random.normal(k, shape, jnp.float32)

    # fold the 1/sqrt(head_dim) attention scale into the Q weights (exact: 0.25)
    q_scale = 1.0 / (HEAD_DIM ** 0.5)
    wq = norm(ks[2], (LAYERS, HIDDEN, HIDDEN)) * q_scale
    wk = norm(ks[3], (LAYERS, HIDDEN, HIDDEN))
    wv = norm(ks[4], (LAYERS, HIDDEN, HIDDEN))
    wqkv = jnp.concatenate([wq, wk, wv], axis=-1)          # [L, H, 3H]

    wcls = jnp.zeros((HIDDEN, CLS_PAD), jnp.float32)
    wcls = wcls.at[:, :NUM_CLASSES].set(norm(ks[8], (HIDDEN, NUM_CLASSES)))

    return {
        "word_emb": norm(ks[0], (VOCAB, HIDDEN)),
        "pos_emb": norm(ks[1], (MAX_POS, HIDDEN)),
        "emb_ln_g": jnp.ones((1, HIDDEN), jnp.float32),
        "emb_ln_b": jnp.zeros((1, HIDDEN), jnp.float32),
        "wqkv": wqkv.astype(jnp.bfloat16),
        "bqkv": jnp.zeros((LAYERS, 1, 3 * HIDDEN), jnp.float32),
        "wo": norm(ks[5], (LAYERS, HIDDEN, HIDDEN)).astype(jnp.bfloat16),
        "bo": jnp.zeros((LAYERS, 1, HIDDEN), jnp.float32),
        "ln1_g": jnp.ones((LAYERS, 1, HIDDEN), jnp.float32),
        "ln1_b": jnp.zeros((LAYERS, 1, HIDDEN), jnp.float32),
        "w1": norm(ks[6], (LAYERS, HIDDEN, FFN)).astype(jnp.bfloat16),
        "b1": jnp.zeros((LAYERS, 1, FFN), jnp.float32),
        "w2": norm(ks[7], (LAYERS, FFN, HIDDEN)).astype(jnp.bfloat16),
        "b2": jnp.zeros((LAYERS, 1, HIDDEN), jnp.float32),
        "ln2_g": jnp.ones((LAYERS, 1, HIDDEN), jnp.float32),
        "ln2_b": jnp.zeros((LAYERS, 1, HIDDEN), jnp.float32),
        "wcls": wcls.astype(jnp.bfloat16),
        "bcls": jnp.zeros((1, CLS_PAD), jnp.float32),
    }


# ------------------------------ forward pass ----------------------------------
def distilbert_classifier_forward(params, input_ids, attention_mask):
    B, S = input_ids.shape

    # TODO(synk): embedding-table gather stays as XLA glue before the fused
    # kernel; at real shapes it could be folded in via PrefetchScalarGridSpec
    # (input_ids scalar-prefetched) + a pl.Element row-gather BlockSpec.
    pos_ids = jnp.arange(S)
    x = params["word_emb"][input_ids] + params["pos_emb"][pos_ids][None, :, :]
    x = x.reshape(B * S, HIDDEN)

    # additive mask: 0.0 for keep, -1e30 for masked
    mask_add = (1.0 - attention_mask.astype(jnp.float32)) * NEG_INF   # [B, S]

    logits_pad = pl.pallas_call(
        _distilbert_kernel,
        out_shape=jax.ShapeDtypeStruct((B_PAD, CLS_PAD), jnp.float32),
        in_specs=[_VMEM] * 18,
        out_specs=_VMEM,
        compiler_params=pltpu.CompilerParams(
            vmem_limit_bytes=32 * 1024 * 1024),   # safe on v5e/v6e/v7x at these shapes
    )(x, mask_add,
      params["emb_ln_g"], params["emb_ln_b"],
      params["wqkv"], params["bqkv"], params["wo"], params["bo"],
      params["ln1_g"], params["ln1_b"],
      params["w1"], params["b1"], params["w2"], params["b2"],
      params["ln2_g"], params["ln2_b"],
      params["wcls"], params["bcls"])

    # hidden_state = last_hidden_state[:, 0, :] ([CLS]) was classified in-kernel;
    # slice the B real rows and 2 real logits out of the padded (8, 128) output.
    return logits_pad[:B, :NUM_CLASSES]


# ---------------------------------- main --------------------------------------
if __name__ == "__main__":
    key = jax.random.PRNGKey(0)
    k_ids, k_params = jax.random.split(key)

    input_ids = jax.random.randint(k_ids, (BATCH, SEQ), 0, VOCAB, dtype=jnp.int32)
    attention_mask = jnp.ones((BATCH, SEQ), jnp.int32).at[1, SEQ - 2:].set(0)

    params = init_params(k_params)

    logits = jax.jit(distilbert_classifier_forward)(params, input_ids, attention_mask)
    jax.block_until_ready(logits)

    assert logits.shape == (BATCH, NUM_CLASSES)
    assert logits.dtype == jnp.float32
    print("KERNEL_OK")
</pallas_src>

<mosaic_0001>
module attributes {stable_mosaic.version = 11 : i64} {
  func.func @_distilbert_kernel(%arg0: memref<16x64xf32, #tpu.memory_space<vmem>>, %arg1: memref<2x8xf32, #tpu.memory_space<vmem>>, %arg2: memref<1x64xf32, #tpu.memory_space<vmem>>, %arg3: memref<1x64xf32, #tpu.memory_space<vmem>>, %arg4: memref<2x64x192xbf16, #tpu.memory_space<vmem>>, %arg5: memref<2x1x192xf32, #tpu.memory_space<vmem>>, %arg6: memref<2x64x64xbf16, #tpu.memory_space<vmem>>, %arg7: memref<2x1x64xf32, #tpu.memory_space<vmem>>, %arg8: memref<2x1x64xf32, #tpu.memory_space<vmem>>, %arg9: memref<2x1x64xf32, #tpu.memory_space<vmem>>, %arg10: memref<2x64x128xbf16, #tpu.memory_space<vmem>>, %arg11: memref<2x1x128xf32, #tpu.memory_space<vmem>>, %arg12: memref<2x128x64xbf16, #tpu.memory_space<vmem>>, %arg13: memref<2x1x64xf32, #tpu.memory_space<vmem>>, %arg14: memref<2x1x64xf32, #tpu.memory_space<vmem>>, %arg15: memref<2x1x64xf32, #tpu.memory_space<vmem>>, %arg16: memref<64x128xbf16, #tpu.memory_space<vmem>>, %arg17: memref<1x128xf32, #tpu.memory_space<vmem>>, %arg18: memref<8x128xf32, #tpu.memory_space<vmem>>) attributes {dimension_semantics = [], scalar_prefetch = 0 : i64, scratch_operands = 0 : i64, tpu.core_type = #tpu.core_type<tc>} {
    %c0 = arith.constant 0 : index
    %c0_0 = arith.constant 0 : index
    %0 = vector.load %arg1[%c0, %c0_0] : memref<2x8xf32, #tpu.memory_space<vmem>>, vector<2x8xf32>
    %1 = vector.shape_cast %0 : vector<2x8xf32> to vector<2x1x8xf32>
    %c0_1 = arith.constant 0 : index
    %c0_2 = arith.constant 0 : index
    %2 = vector.load %arg0[%c0_1, %c0_2] : memref<16x64xf32, #tpu.memory_space<vmem>>, vector<16x64xf32>
    %c0_3 = arith.constant 0 : index
    %c0_4 = arith.constant 0 : index
    %3 = vector.load %arg2[%c0_3, %c0_4] : memref<1x64xf32, #tpu.memory_space<vmem>>, vector<1x64xf32>
    %c0_5 = arith.constant 0 : index
    %c0_6 = arith.constant 0 : index
    %4 = vector.load %arg3[%c0_5, %c0_6] : memref<1x64xf32, #tpu.memory_space<vmem>>, vector<1x64xf32>
    %cst = arith.constant dense<0.000000e+00> : vector<16xf32>
    %5 = vector.multi_reduction <add>, %2, %cst [1] : vector<16x64xf32> to vector<16xf32>
    %6 = vector.shape_cast %5 : vector<16xf32> to vector<16x1xf32>
    %cst_7 = arith.constant 6.400000e+01 : f32
    %7 = vector.broadcast %cst_7 : f32 to vector<16x1xf32>
    %8 = arith.divf %6, %7 : vector<16x1xf32>
    %9 = vector.broadcast %8 : vector<16x1xf32> to vector<16x64xf32>
    %10 = arith.subf %2, %9 : vector<16x64xf32>
    %11 = arith.mulf %10, %10 : vector<16x64xf32>
    %cst_8 = arith.constant dense<0.000000e+00> : vector<16xf32>
    %12 = vector.multi_reduction <add>, %11, %cst_8 [1] : vector<16x64xf32> to vector<16xf32>
    %13 = vector.shape_cast %12 : vector<16xf32> to vector<16x1xf32>
    %cst_9 = arith.constant 6.400000e+01 : f32
    %14 = vector.broadcast %cst_9 : f32 to vector<16x1xf32>
    %15 = arith.divf %13, %14 : vector<16x1xf32>
    %cst_10 = arith.constant 9.99999996E-13 : f32
    %16 = vector.broadcast %cst_10 : f32 to vector<16x1xf32>
    %17 = arith.addf %15, %16 : vector<16x1xf32>
    %18 = math.rsqrt %17 : vector<16x1xf32>
    %19 = vector.broadcast %18 : vector<16x1xf32> to vector<16x64xf32>
    %20 = arith.mulf %10, %19 : vector<16x64xf32>
    %21 = vector.broadcast %3 : vector<1x64xf32> to vector<16x64xf32>
    %22 = arith.mulf %20, %21 : vector<16x64xf32>
    %23 = vector.broadcast %4 : vector<1x64xf32> to vector<16x64xf32>
    %24 = arith.addf %22, %23 : vector<16x64xf32>
    %c0_11 = arith.constant 0 : index
    %c0_12 = arith.constant 0 : index
    %c0_13 = arith.constant 0 : index
    %25 = vector.load %arg4[%c0_11, %c0_12, %c0_13] : memref<2x64x192xbf16, #tpu.memory_space<vmem>>, vector<1x64x192xbf16>
    %26 = vector.shape_cast %25 : vector<1x64x192xbf16> to vector<64x192xbf16>
    %c0_14 = arith.constant 0 : index
    %c0_15 = arith.constant 0 : index
    %c0_16 = arith.constant 0 : index
    %27 = vector.load %arg5[%c0_14, %c0_15, %c0_16] : memref<2x1x192xf32, #tpu.memory_space<vmem>>, vector<1x1x192xf32>
    %28 = vector.shape_cast %27 : vector<1x1x192xf32> to vector<1x192xf32>
    %c0_17 = arith.constant 0 : index
    %c0_18 = arith.constant 0 : index
    %c0_19 = arith.constant 0 : index
    %29 = vector.load %arg6[%c0_17, %c0_18, %c0_19] : memref<2x64x64xbf16, #tpu.memory_space<vmem>>, vector<1x64x64xbf16>
    %30 = vector.shape_cast %29 : vector<1x64x64xbf16> to vector<64x64xbf16>
    %c0_20 = arith.constant 0 : index
    %c0_21 = arith.constant 0 : index
    %c0_22 = arith.constant 0 : index
    %31 = vector.load %arg7[%c0_20, %c0_21, %c0_22] : memref<2x1x64xf32, #tpu.memory_space<vmem>>, vector<1x1x64xf32>
    %32 = vector.shape_cast %31 : vector<1x1x64xf32> to vector<1x64xf32>
    %c0_23 = arith.constant 0 : index
    %c0_24 = arith.constant 0 : index
    %c0_25 = arith.constant 0 : index
    %33 = vector.load %arg8[%c0_23, %c0_24, %c0_25] : memref<2x1x64xf32, #tpu.memory_space<vmem>>, vector<1x1x64xf32>
    %34 = vector.shape_cast %33 : vector<1x1x64xf32> to vector<1x64xf32>
    %c0_26 = arith.constant 0 : index
    %c0_27 = arith.constant 0 : index
    %c0_28 = arith.constant 0 : index
    %35 = vector.load %arg9[%c0_26, %c0_27, %c0_28] : memref<2x1x64xf32, #tpu.memory_space<vmem>>, vector<1x1x64xf32>
    %36 = vector.shape_cast %35 : vector<1x1x64xf32> to vector<1x64xf32>
    %c0_29 = arith.constant 0 : index
    %c0_30 = arith.constant 0 : index
    %c0_31 = arith.constant 0 : index
    %37 = vector.load %arg10[%c0_29, %c0_30, %c0_31] : memref<2x64x128xbf16, #tpu.memory_space<vmem>>, vector<1x64x128xbf16>
    %38 = vector.shape_cast %37 : vector<1x64x128xbf16> to vector<64x128xbf16>
    %c0_32 = arith.constant 0 : index
    %c0_33 = arith.constant 0 : index
    %c0_34 = arith.constant 0 : index
    %39 = vector.load %arg11[%c0_32, %c0_33, %c0_34] : memref<2x1x128xf32, #tpu.memory_space<vmem>>, vector<1x1x128xf32>
    %40 = vector.shape_cast %39 : vector<1x1x128xf32> to vector<1x128xf32>
    %c0_35 = arith.constant 0 : index
    %c0_36 = arith.constant 0 : index
    %c0_37 = arith.constant 0 : index
    %41 = vector.load %arg12[%c0_35, %c0_36, %c0_37] : memref<2x128x64xbf16, #tpu.memory_space<vmem>>, vector<1x128x64xbf16>
    %42 = vector.shape_cast %41 : vector<1x128x64xbf16> to vector<128x64xbf16>
    %c0_38 = arith.constant 0 : index
    %c0_39 = arith.constant 0 : index
    %c0_40 = arith.constant 0 : index
    %43 = vector.load %arg13[%c0_38, %c0_39, %c0_40] : memref<2x1x64xf32, #tpu.memory_space<vmem>>, vector<1x1x64xf32>
    %44 = vector.shape_cast %43 : vector<1x1x64xf32> to vector<1x64xf32>
    %c0_41 = arith.constant 0 : index
    %c0_42 = arith.constant 0 : index
    %c0_43 = arith.constant 0 : index
    %45 = vector.load %arg14[%c0_41, %c0_42, %c0_43] : memref<2x1x64xf32, #tpu.memory_space<vmem>>, vector<1x1x64xf32>
    %46 = vector.shape_cast %45 : vector<1x1x64xf32> to vector<1x64xf32>
    %c0_44 = arith.constant 0 : index
    %c0_45 = arith.constant 0 : index
    %c0_46 = arith.constant 0 : index
    %47 = vector.load %arg15[%c0_44, %c0_45, %c0_46] : memref<2x1x64xf32, #tpu.memory_space<vmem>>, vector<1x1x64xf32>
    %48 = vector.shape_cast %47 : vector<1x1x64xf32> to vector<1x64xf32>
    %49 = arith.truncf %24 : vector<16x64xf32> to vector<16x64xbf16>
    %cst_47 = arith.constant dense<0.000000e+00> : vector<16x192xf32>
    %50 = tpu.matmul %49, %26, %cst_47 {dimension_numbers = #tpu.dot_dimension_numbers<[1], [0], [0], [1], [0, 0, 1, 1], [], []>} : vector<16x64xbf16>, vector<64x192xbf16>, vector<16x192xf32> -> vector<16x192xf32>
    %51 = vector.broadcast %28 : vector<1x192xf32> to vector<16x192xf32>
    %52 = arith.addf %50, %51 : vector<16x192xf32>
    %53 = vector.shape_cast %52 : vector<16x192xf32> to vector<2x8x192xf32>
    %54 = vector.extract_strided_slice %53 {offsets = [0, 0, 0], sizes = [2, 8, 16], strides = [1, 1, 1]} : vector<2x8x192xf32> to vector<2x8x16xf32>
    %55 = arith.truncf %54 : vector<2x8x16xf32> to vector<2x8x16xbf16>
    %56 = vector.extract_strided_slice %53 {offsets = [0, 0, 64], sizes = [2, 8, 16], strides = [1, 1, 1]} : vector<2x8x192xf32> to vector<2x8x16xf32>
    %57 = arith.truncf %56 : vector<2x8x16xf32> to vector<2x8x16xbf16>
    %58 = vector.extract_strided_slice %53 {offsets = [0, 0, 128], sizes = [2, 8, 16], strides = [1, 1, 1]} : vector<2x8x192xf32> to vector<2x8x16xf32>
    %59 = arith.truncf %58 : vector<2x8x16xf32> to vector<2x8x16xbf16>
    "tpu.trace_start"() <{level = 10 : i32, message = "bqd,bkd->bqk"}> : () -> ()
    %cst_48 = arith.constant dense<0.000000e+00> : vector<2x8x8xf32>
    %60 = tpu.matmul %55, %57, %cst_48 {dimension_numbers = #tpu.dot_dimension_numbers<[2], [2], [1], [1], [0, 0, 0, 1, 1, 1], [0], [0]>} : vector<2x8x16xbf16>, vector<2x8x16xbf16>, vector<2x8x8xf32> -> vector<2x8x8xf32>
    "tpu.trace_stop"() : () -> ()
    %61 = vector.broadcast %1 : vector<2x1x8xf32> to vector<2x8x8xf32>
    %62 = arith.addf %60, %61 : vector<2x8x8xf32>
    %cst_49 = arith.constant dense<0xFF800000> : vector<2x8xf32>
    %63 = vector.multi_reduction <maximumf>, %62, %cst_49 [2] : vector<2x8x8xf32> to vector<2x8xf32>
    %64 = vector.shape_cast %63 : vector<2x8xf32> to vector<2x8x1xf32>
    %65 = vector.broadcast %64 : vector<2x8x1xf32> to vector<2x8x8xf32>
    %66 = arith.subf %62, %65 : vector<2x8x8xf32>
    %67 = math.exp %66 : vector<2x8x8xf32>
    %cst_50 = arith.constant dense<0.000000e+00> : vector<2x8xf32>
    %68 = vector.multi_reduction <add>, %67, %cst_50 [2] : vector<2x8x8xf32> to vector<2x8xf32>
    %69 = vector.shape_cast %68 : vector<2x8xf32> to vector<2x8x1xf32>
    %70 = tpu.reciprocal %69 {approx = true} : vector<2x8x1xf32> -> vector<2x8x1xf32>
    %71 = arith.truncf %67 : vector<2x8x8xf32> to vector<2x8x8xbf16>
    "tpu.trace_start"() <{level = 10 : i32, message = "bqk,bkd->bqd"}> : () -> ()
    %cst_51 = arith.constant dense<0.000000e+00> : vector<2x8x16xf32>
    %72 = tpu.matmul %71, %59, %cst_51 {dimension_numbers = #tpu.dot_dimension_numbers<[2], [1], [1], [2], [0, 0, 0, 1, 1, 2], [0], [0]>} : vector<2x8x8xbf16>, vector<2x8x16xbf16>, vector<2x8x16xf32> -> vector<2x8x16xf32>
    "tpu.trace_stop"() : () -> ()
    %73 = vector.broadcast %70 : vector<2x8x1xf32> to vector<2x8x16xf32>
    %74 = arith.mulf %72, %73 : vector<2x8x16xf32>
    %75 = vector.extract_strided_slice %53 {offsets = [0, 0, 16], sizes = [2, 8, 16], strides = [1, 1, 1]} : vector<2x8x192xf32> to vector<2x8x16xf32>
    %76 = arith.truncf %75 : vector<2x8x16xf32> to vector<2x8x16xbf16>
    %77 = vector.extract_strided_slice %53 {offsets = [0, 0, 80], sizes = [2, 8, 16], strides = [1, 1, 1]} : vector<2x8x192xf32> to vector<2x8x16xf32>
    %78 = arith.truncf %77 : vector<2x8x16xf32> to vector<2x8x16xbf16>
    %79 = vector.extract_strided_slice %53 {offsets = [0, 0, 144], sizes = [2, 8, 16], strides = [1, 1, 1]} : vector<2x8x192xf32> to vector<2x8x16xf32>
    %80 = arith.truncf %79 : vector<2x8x16xf32> to vector<2x8x16xbf16>
    "tpu.trace_start"() <{level = 10 : i32, message = "bqd,bkd->bqk"}> : () -> ()
    %cst_52 = arith.constant dense<0.000000e+00> : vector<2x8x8xf32>
    %81 = tpu.matmul %76, %78, %cst_52 {dimension_numbers = #tpu.dot_dimension_numbers<[2], [2], [1], [1], [0, 0, 0, 1, 1, 1], [0], [0]>} : vector<2x8x16xbf16>, vector<2x8x16xbf16>, vector<2x8x8xf32> -> vector<2x8x8xf32>
    "tpu.trace_stop"() : () -> ()
    %82 = vector.broadcast %1 : vector<2x1x8xf32> to vector<2x8x8xf32>
    %83 = arith.addf %81, %82 : vector<2x8x8xf32>
    %cst_53 = arith.constant dense<0xFF800000> : vector<2x8xf32>
    %84 = vector.multi_reduction <maximumf>, %83, %cst_53 [2] : vector<2x8x8xf32> to vector<2x8xf32>
    %85 = vector.shape_cast %84 : vector<2x8xf32> to vector<2x8x1xf32>
    %86 = vector.broadcast %85 : vector<2x8x1xf32> to vector<2x8x8xf32>
    %87 = arith.subf %83, %86 : vector<2x8x8xf32>
    %88 = math.exp %87 : vector<2x8x8xf32>
    %cst_54 = arith.constant dense<0.000000e+00> : vector<2x8xf32>
    %89 = vector.multi_reduction <add>, %88, %cst_54 [2] : vector<2x8x8xf32> to vector<2x8xf32>
    %90 = vector.shape_cast %89 : vector<2x8xf32> to vector<2x8x1xf32>
    %91 = tpu.reciprocal %90 {approx = true} : vector<2x8x1xf32> -> vector<2x8x1xf32>
    %92 = arith.truncf %88 : vector<2x8x8xf32> to vector<2x8x8xbf16>
    "tpu.trace_start"() <{level = 10 : i32, message = "bqk,bkd->bqd"}> : () -> ()
    %cst_55 = arith.constant dense<0.000000e+00> : vector<2x8x16xf32>
    %93 = tpu.matmul %92, %80, %cst_55 {dimension_numbers = #tpu.dot_dimension_numbers<[2], [1], [1], [2], [0, 0, 0, 1, 1, 2], [0], [0]>} : vector<2x8x8xbf16>, vector<2x8x16xbf16>, vector<2x8x16xf32> -> vector<2x8x16xf32>
    "tpu.trace_stop"() : () -> ()
    %94 = vector.broadcast %91 : vector<2x8x1xf32> to vector<2x8x16xf32>
    %95 = arith.mulf %93, %94 : vector<2x8x16xf32>
    %96 = vector.extract_strided_slice %53 {offsets = [0, 0, 32], sizes = [2, 8, 16], strides = [1, 1, 1]} : vector<2x8x192xf32> to vector<2x8x16xf32>
    %97 = arith.truncf %96 : vector<2x8x16xf32> to vector<2x8x16xbf16>
    %98 = vector.extract_strided_slice %53 {offsets = [0, 0, 96], sizes = [2, 8, 16], strides = [1, 1, 1]} : vector<2x8x192xf32> to vector<2x8x16xf32>
    %99 = arith.truncf %98 : vector<2x8x16xf32> to vector<2x8x16xbf16>
    %100 = vector.extract_strided_slice %53 {offsets = [0, 0, 160], sizes = [2, 8, 16], strides = [1, 1, 1]} : vector<2x8x192xf32> to vector<2x8x16xf32>
    %101 = arith.truncf %100 : vector<2x8x16xf32> to vector<2x8x16xbf16>
    "tpu.trace_start"() <{level = 10 : i32, message = "bqd,bkd->bqk"}> : () -> ()
    %cst_56 = arith.constant dense<0.000000e+00> : vector<2x8x8xf32>
    %102 = tpu.matmul %97, %99, %cst_56 {dimension_numbers = #tpu.dot_dimension_numbers<[2], [2], [1], [1], [0, 0, 0, 1, 1, 1], [0], [0]>} : vector<2x8x16xbf16>, vector<2x8x16xbf16>, vector<2x8x8xf32> -> vector<2x8x8xf32>
    "tpu.trace_stop"() : () -> ()
    %103 = vector.broadcast %1 : vector<2x1x8xf32> to vector<2x8x8xf32>
    %104 = arith.addf %102, %103 : vector<2x8x8xf32>
    %cst_57 = arith.constant dense<0xFF800000> : vector<2x8xf32>
    %105 = vector.multi_reduction <maximumf>, %104, %cst_57 [2] : vector<2x8x8xf32> to vector<2x8xf32>
    %106 = vector.shape_cast %105 : vector<2x8xf32> to vector<2x8x1xf32>
    %107 = vector.broadcast %106 : vector<2x8x1xf32> to vector<2x8x8xf32>
    %108 = arith.subf %104, %107 : vector<2x8x8xf32>
    %109 = math.exp %108 : vector<2x8x8xf32>
    %cst_58 = arith.constant dense<0.000000e+00> : vector<2x8xf32>
    %110 = vector.multi_reduction <add>, %109, %cst_58 [2] : vector<2x8x8xf32> to vector<2x8xf32>
    %111 = vector.shape_cast %110 : vector<2x8xf32> to vector<2x8x1xf32>
    %112 = tpu.reciprocal %111 {approx = true} : vector<2x8x1xf32> -> vector<2x8x1xf32>
    %113 = arith.truncf %109 : vector<2x8x8xf32> to vector<2x8x8xbf16>
    "tpu.trace_start"() <{level = 10 : i32, message = "bqk,bkd->bqd"}> : () -> ()
    %cst_59 = arith.constant dense<0.000000e+00> : vector<2x8x16xf32>
    %114 = tpu.matmul %113, %101, %cst_59 {dimension_numbers = #tpu.dot_dimension_numbers<[2], [1], [1], [2], [0, 0, 0, 1, 1, 2], [0], [0]>} : vector<2x8x8xbf16>, vector<2x8x16xbf16>, vector<2x8x16xf32> -> vector<2x8x16xf32>
    "tpu.trace_stop"() : () -> ()
    %115 = vector.broadcast %112 : vector<2x8x1xf32> to vector<2x8x16xf32>
    %116 = arith.mulf %114, %115 : vector<2x8x16xf32>
    %117 = vector.extract_strided_slice %53 {offsets = [0, 0, 48], sizes = [2, 8, 16], strides = [1, 1, 1]} : vector<2x8x192xf32> to vector<2x8x16xf32>
    %118 = arith.truncf %117 : vector<2x8x16xf32> to vector<2x8x16xbf16>
    %119 = vector.extract_strided_slice %53 {offsets = [0, 0, 112], sizes = [2, 8, 16], strides = [1, 1, 1]} : vector<2x8x192xf32> to vector<2x8x16xf32>
    %120 = arith.truncf %119 : vector<2x8x16xf32> to vector<2x8x16xbf16>
    %121 = vector.extract_strided_slice %53 {offsets = [0, 0, 176], sizes = [2, 8, 16], strides = [1, 1, 1]} : vector<2x8x192xf32> to vector<2x8x16xf32>
    %122 = arith.truncf %121 : vector<2x8x16xf32> to vector<2x8x16xbf16>
    "tpu.trace_start"() <{level = 10 : i32, message = "bqd,bkd->bqk"}> : () -> ()
    %cst_60 = arith.constant dense<0.000000e+00> : vector<2x8x8xf32>
    %123 = tpu.matmul %118, %120, %cst_60 {dimension_numbers = #tpu.dot_dimension_numbers<[2], [2], [1], [1], [0, 0, 0, 1, 1, 1], [0], [0]>} : vector<2x8x16xbf16>, vector<2x8x16xbf16>, vector<2x8x8xf32> -> vector<2x8x8xf32>
    "tpu.trace_stop"() : () -> ()
    %124 = vector.broadcast %1 : vector<2x1x8xf32> to vector<2x8x8xf32>
    %125 = arith.addf %123, %124 : vector<2x8x8xf32>
    %cst_61 = arith.constant dense<0xFF800000> : vector<2x8xf32>
    %126 = vector.multi_reduction <maximumf>, %125, %cst_61 [2] : vector<2x8x8xf32> to vector<2x8xf32>
    %127 = vector.shape_cast %126 : vector<2x8xf32> to vector<2x8x1xf32>
    %128 = vector.broadcast %127 : vector<2x8x1xf32> to vector<2x8x8xf32>
    %129 = arith.subf %125, %128 : vector<2x8x8xf32>
    %130 = math.exp %129 : vector<2x8x8xf32>
    %cst_62 = arith.constant dense<0.000000e+00> : vector<2x8xf32>
    %131 = vector.multi_reduction <add>, %130, %cst_62 [2] : vector<2x8x8xf32> to vector<2x8xf32>
    %132 = vector.shape_cast %131 : vector<2x8xf32> to vector<2x8x1xf32>
    %133 = tpu.reciprocal %132 {approx = true} : vector<2x8x1xf32> -> vector<2x8x1xf32>
    %134 = arith.truncf %130 : vector<2x8x8xf32> to vector<2x8x8xbf16>
    "tpu.trace_start"() <{level = 10 : i32, message = "bqk,bkd->bqd"}> : () -> ()
    %cst_63 = arith.constant dense<0.000000e+00> : vector<2x8x16xf32>
    %135 = tpu.matmul %134, %122, %cst_63 {dimension_numbers = #tpu.dot_dimension_numbers<[2], [1], [1], [2], [0, 0, 0, 1, 1, 2], [0], [0]>} : vector<2x8x8xbf16>, vector<2x8x16xbf16>, vector<2x8x16xf32> -> vector<2x8x16xf32>
    "tpu.trace_stop"() : () -> ()
    %136 = vector.broadcast %133 : vector<2x8x1xf32> to vector<2x8x16xf32>
    %137 = arith.mulf %135, %136 : vector<2x8x16xf32>
    %138 = tpu.concatenate %74, %95, %116, %137 in 2 : vector<2x8x16xf32>, vector<2x8x16xf32>, vector<2x8x16xf32>, vector<2x8x16xf32> -> vector<2x8x64xf32>
    %139 = vector.shape_cast %138 : vector<2x8x64xf32> to vector<16x64xf32>
    %140 = arith.truncf %139 : vector<16x64xf32> to vector<16x64xbf16>
    %cst_64 = arith.constant dense<0.000000e+00> : vector<16x64xf32>
    %141 = tpu.matmul %140, %30, %cst_64 {dimension_numbers = #tpu.dot_dimension_numbers<[1], [0], [0], [1], [0, 0, 1, 1], [], []>} : vector<16x64xbf16>, vector<64x64xbf16>, vector<16x64xf32> -> vector<16x64xf32>
    %142 = vector.broadcast %32 : vector<1x64xf32> to vector<16x64xf32>
    %143 = arith.addf %141, %142 : vector<16x64xf32>
    %144 = arith.addf %24, %143 : vector<16x64xf32>
    %cst_65 = arith.constant dense<0.000000e+00> : vector<16xf32>
    %145 = vector.multi_reduction <add>, %144, %cst_65 [1] : vector<16x64xf32> to vector<16xf32>
    %146 = vector.shape_cast %145 : vector<16xf32> to vector<16x1xf32>
    %cst_66 = arith.constant 6.400000e+01 : f32
    %147 = vector.broadcast %cst_66 : f32 to vector<16x1xf32>
    %148 = arith.divf %146, %147 : vector<16x1xf32>
    %149 = vector.broadcast %148 : vector<16x1xf32> to vector<16x64xf32>
    %150 = arith.subf %144, %149 : vector<16x64xf32>
    %151 = arith.mulf %150, %150 : vector<16x64xf32>
    %cst_67 = arith.constant dense<0.000000e+00> : vector<16xf32>
    %152 = vector.multi_reduction <add>, %151, %cst_67 [1] : vector<16x64xf32> to vector<16xf32>
    %153 = vector.shape_cast %152 : vector<16xf32> to vector<16x1xf32>
    %cst_68 = arith.constant 6.400000e+01 : f32
    %154 = vector.broadcast %cst_68 : f32 to vector<16x1xf32>
    %155 = arith.divf %153, %154 : vector<16x1xf32>
    %cst_69 = arith.constant 9.99999996E-13 : f32
    %156 = vector.broadcast %cst_69 : f32 to vector<16x1xf32>
    %157 = arith.addf %155, %156 : vector<16x1xf32>
    %158 = math.rsqrt %157 : vector<16x1xf32>
    %159 = vector.broadcast %158 : vector<16x1xf32> to vector<16x64xf32>
    %160 = arith.mulf %150, %159 : vector<16x64xf32>
    %161 = vector.broadcast %34 : vector<1x64xf32> to vector<16x64xf32>
    %162 = arith.mulf %160, %161 : vector<16x64xf32>
    %163 = vector.broadcast %36 : vector<1x64xf32> to vector<16x64xf32>
    %164 = arith.addf %162, %163 : vector<16x64xf32>
    %165 = arith.truncf %164 : vector<16x64xf32> to vector<16x64xbf16>
    %cst_70 = arith.constant dense<0.000000e+00> : vector<16x128xf32>
    %166 = tpu.matmul %165, %38, %cst_70 {dimension_numbers = #tpu.dot_dimension_numbers<[1], [0], [0], [1], [0, 0, 1, 1], [], []>} : vector<16x64xbf16>, vector<64x128xbf16>, vector<16x128xf32> -> vector<16x128xf32>
    %167 = vector.broadcast %40 : vector<1x128xf32> to vector<16x128xf32>
    %168 = arith.addf %166, %167 : vector<16x128xf32>
    %cst_71 = arith.constant 5.000000e-01 : f32
    %169 = vector.broadcast %cst_71 : f32 to vector<16x128xf32>
    %170 = arith.mulf %169, %168 : vector<16x128xf32>
    %cst_72 = arith.constant 4.471500e-02 : f32
    %171 = vector.broadcast %cst_72 : f32 to vector<16x128xf32>
    %172 = arith.mulf %171, %168 : vector<16x128xf32>
    %173 = arith.mulf %172, %168 : vector<16x128xf32>
    %174 = arith.mulf %173, %168 : vector<16x128xf32>
    %175 = arith.addf %168, %174 : vector<16x128xf32>
    %cst_73 = arith.constant 0.797884583 : f32
    %176 = vector.broadcast %cst_73 : f32 to vector<16x128xf32>
    %177 = arith.mulf %176, %175 : vector<16x128xf32>
    %178 = math.tanh %177 : vector<16x128xf32>
    %cst_74 = arith.constant 1.000000e+00 : f32
    %179 = vector.broadcast %cst_74 : f32 to vector<16x128xf32>
    %180 = arith.addf %179, %178 : vector<16x128xf32>
    %181 = arith.mulf %170, %180 : vector<16x128xf32>
    %182 = arith.truncf %181 : vector<16x128xf32> to vector<16x128xbf16>
    %cst_75 = arith.constant dense<0.000000e+00> : vector<16x64xf32>
    %183 = tpu.matmul %182, %42, %cst_75 {dimension_numbers = #tpu.dot_dimension_numbers<[1], [0], [0], [1], [0, 0, 1, 1], [], []>} : vector<16x128xbf16>, vector<128x64xbf16>, vector<16x64xf32> -> vector<16x64xf32>
    %184 = vector.broadcast %44 : vector<1x64xf32> to vector<16x64xf32>
    %185 = arith.addf %183, %184 : vector<16x64xf32>
    %186 = arith.addf %164, %185 : vector<16x64xf32>
    %cst_76 = arith.constant dense<0.000000e+00> : vector<16xf32>
    %187 = vector.multi_reduction <add>, %186, %cst_76 [1] : vector<16x64xf32> to vector<16xf32>
    %188 = vector.shape_cast %187 : vector<16xf32> to vector<16x1xf32>
    %cst_77 = arith.constant 6.400000e+01 : f32
    %189 = vector.broadcast %cst_77 : f32 to vector<16x1xf32>
    %190 = arith.divf %188, %189 : vector<16x1xf32>
    %191 = vector.broadcast %190 : vector<16x1xf32> to vector<16x64xf32>
    %192 = arith.subf %186, %191 : vector<16x64xf32>
    %193 = arith.mulf %192, %192 : vector<16x64xf32>
    %cst_78 = arith.constant dense<0.000000e+00> : vector<16xf32>
    %194 = vector.multi_reduction <add>, %193, %cst_78 [1] : vector<16x64xf32> to vector<16xf32>
    %195 = vector.shape_cast %194 : vector<16xf32> to vector<16x1xf32>
    %cst_79 = arith.constant 6.400000e+01 : f32
    %196 = vector.broadcast %cst_79 : f32 to vector<16x1xf32>
    %197 = arith.divf %195, %196 : vector<16x1xf32>
    %cst_80 = arith.constant 9.99999996E-13 : f32
    %198 = vector.broadcast %cst_80 : f32 to vector<16x1xf32>
    %199 = arith.addf %197, %198 : vector<16x1xf32>
    %200 = math.rsqrt %199 : vector<16x1xf32>
    %201 = vector.broadcast %200 : vector<16x1xf32> to vector<16x64xf32>
    %202 = arith.mulf %192, %201 : vector<16x64xf32>
    %203 = vector.broadcast %46 : vector<1x64xf32> to vector<16x64xf32>
    %204 = arith.mulf %202, %203 : vector<16x64xf32>
    %205 = vector.broadcast %48 : vector<1x64xf32> to vector<16x64xf32>
    %206 = arith.addf %204, %205 : vector<16x64xf32>
    %c1 = arith.constant 1 : index
    %c0_81 = arith.constant 0 : index
    %c0_82 = arith.constant 0 : index
    %207 = vector.load %arg4[%c1, %c0_81, %c0_82] : memref<2x64x192xbf16, #tpu.memory_space<vmem>>, vector<1x64x192xbf16>
    %208 = vector.shape_cast %207 : vector<1x64x192xbf16> to vector<64x192xbf16>
    %c1_83 = arith.constant 1 : index
    %c0_84 = arith.constant 0 : index
    %c0_85 = arith.constant 0 : index
    %209 = vector.load %arg5[%c1_83, %c0_84, %c0_85] : memref<2x1x192xf32, #tpu.memory_space<vmem>>, vector<1x1x192xf32>
    %210 = vector.shape_cast %209 : vector<1x1x192xf32> to vector<1x192xf32>
    %c1_86 = arith.constant 1 : index
    %c0_87 = arith.constant 0 : index
    %c0_88 = arith.constant 0 : index
    %211 = vector.load %arg6[%c1_86, %c0_87, %c0_88] : memref<2x64x64xbf16, #tpu.memory_space<vmem>>, vector<1x64x64xbf16>
    %212 = vector.shape_cast %211 : vector<1x64x64xbf16> to vector<64x64xbf16>
    %c1_89 = arith.constant 1 : index
    %c0_90 = arith.constant 0 : index
    %c0_91 = arith.constant 0 : index
    %213 = vector.load %arg7[%c1_89, %c0_90, %c0_91] : memref<2x1x64xf32, #tpu.memory_space<vmem>>, vector<1x1x64xf32>
    %214 = vector.shape_cast %213 : vector<1x1x64xf32> to vector<1x64xf32>
    %c1_92 = arith.constant 1 : index
    %c0_93 = arith.constant 0 : index
    %c0_94 = arith.constant 0 : index
    %215 = vector.load %arg8[%c1_92, %c0_93, %c0_94] : memref<2x1x64xf32, #tpu.memory_space<vmem>>, vector<1x1x64xf32>
    %216 = vector.shape_cast %215 : vector<1x1x64xf32> to vector<1x64xf32>
    %c1_95 = arith.constant 1 : index
    %c0_96 = arith.constant 0 : index
    %c0_97 = arith.constant 0 : index
    %217 = vector.load %arg9[%c1_95, %c0_96, %c0_97] : memref<2x1x64xf32, #tpu.memory_space<vmem>>, vector<1x1x64xf32>
    %218 = vector.shape_cast %217 : vector<1x1x64xf32> to vector<1x64xf32>
    %c1_98 = arith.constant 1 : index
    %c0_99 = arith.constant 0 : index
    %c0_100 = arith.constant 0 : index
    %219 = vector.load %arg10[%c1_98, %c0_99, %c0_100] : memref<2x64x128xbf16, #tpu.memory_space<vmem>>, vector<1x64x128xbf16>
    %220 = vector.shape_cast %219 : vector<1x64x128xbf16> to vector<64x128xbf16>
    %c1_101 = arith.constant 1 : index
    %c0_102 = arith.constant 0 : index
    %c0_103 = arith.constant 0 : index
    %221 = vector.load %arg11[%c1_101, %c0_102, %c0_103] : memref<2x1x128xf32, #tpu.memory_space<vmem>>, vector<1x1x128xf32>
    %222 = vector.shape_cast %221 : vector<1x1x128xf32> to vector<1x128xf32>
    %c1_104 = arith.constant 1 : index
    %c0_105 = arith.constant 0 : index
    %c0_106 = arith.constant 0 : index
    %223 = vector.load %arg12[%c1_104, %c0_105, %c0_106] : memref<2x128x64xbf16, #tpu.memory_space<vmem>>, vector<1x128x64xbf16>
    %224 = vector.shape_cast %223 : vector<1x128x64xbf16> to vector<128x64xbf16>
    %c1_107 = arith.constant 1 : index
    %c0_108 = arith.constant 0 : index
    %c0_109 = arith.constant 0 : index
    %225 = vector.load %arg13[%c1_107, %c0_108, %c0_109] : memref<2x1x64xf32, #tpu.memory_space<vmem>>, vector<1x1x64xf32>
    %226 = vector.shape_cast %225 : vector<1x1x64xf32> to vector<1x64xf32>
    %c1_110 = arith.constant 1 : index
    %c0_111 = arith.constant 0 : index
    %c0_112 = arith.constant 0 : index
    %227 = vector.load %arg14[%c1_110, %c0_111, %c0_112] : memref<2x1x64xf32, #tpu.memory_space<vmem>>, vector<1x1x64xf32>
    %228 = vector.shape_cast %227 : vector<1x1x64xf32> to vector<1x64xf32>
    %c1_113 = arith.constant 1 : index
    %c0_114 = arith.constant 0 : index
    %c0_115 = arith.constant 0 : index
    %229 = vector.load %arg15[%c1_113, %c0_114, %c0_115] : memref<2x1x64xf32, #tpu.memory_space<vmem>>, vector<1x1x64xf32>
    %230 = vector.shape_cast %229 : vector<1x1x64xf32> to vector<1x64xf32>
    %231 = arith.truncf %206 : vector<16x64xf32> to vector<16x64xbf16>
    %cst_116 = arith.constant dense<0.000000e+00> : vector<16x192xf32>
    %232 = tpu.matmul %231, %208, %cst_116 {dimension_numbers = #tpu.dot_dimension_numbers<[1], [0], [0], [1], [0, 0, 1, 1], [], []>} : vector<16x64xbf16>, vector<64x192xbf16>, vector<16x192xf32> -> vector<16x192xf32>
    %233 = vector.broadcast %210 : vector<1x192xf32> to vector<16x192xf32>
    %234 = arith.addf %232, %233 : vector<16x192xf32>
    %235 = vector.shape_cast %234 : vector<16x192xf32> to vector<2x8x192xf32>
    %236 = vector.extract_strided_slice %235 {offsets = [0, 0, 0], sizes = [2, 8, 16], strides = [1, 1, 1]} : vector<2x8x192xf32> to vector<2x8x16xf32>
    %237 = arith.truncf %236 : vector<2x8x16xf32> to vector<2x8x16xbf16>
    %238 = vector.extract_strided_slice %235 {offsets = [0, 0, 64], sizes = [2, 8, 16], strides = [1, 1, 1]} : vector<2x8x192xf32> to vector<2x8x16xf32>
    %239 = arith.truncf %238 : vector<2x8x16xf32> to vector<2x8x16xbf16>
    %240 = vector.extract_strided_slice %235 {offsets = [0, 0, 128], sizes = [2, 8, 16], strides = [1, 1, 1]} : vector<2x8x192xf32> to vector<2x8x16xf32>
    %241 = arith.truncf %240 : vector<2x8x16xf32> to vector<2x8x16xbf16>
    "tpu.trace_start"() <{level = 10 : i32, message = "bqd,bkd->bqk"}> : () -> ()
    %cst_117 = arith.constant dense<0.000000e+00> : vector<2x8x8xf32>
    %242 = tpu.matmul %237, %239, %cst_117 {dimension_numbers = #tpu.dot_dimension_numbers<[2], [2], [1], [1], [0, 0, 0, 1, 1, 1], [0], [0]>} : vector<2x8x16xbf16>, vector<2x8x16xbf16>, vector<2x8x8xf32> -> vector<2x8x8xf32>
    "tpu.trace_stop"() : () -> ()
    %243 = vector.broadcast %1 : vector<2x1x8xf32> to vector<2x8x8xf32>
    %244 = arith.addf %242, %243 : vector<2x8x8xf32>
    %cst_118 = arith.constant dense<0xFF800000> : vector<2x8xf32>
    %245 = vector.multi_reduction <maximumf>, %244, %cst_118 [2] : vector<2x8x8xf32> to vector<2x8xf32>
    %246 = vector.shape_cast %245 : vector<2x8xf32> to vector<2x8x1xf32>
    %247 = vector.broadcast %246 : vector<2x8x1xf32> to vector<2x8x8xf32>
    %248 = arith.subf %244, %247 : vector<2x8x8xf32>
    %249 = math.exp %248 : vector<2x8x8xf32>
    %cst_119 = arith.constant dense<0.000000e+00> : vector<2x8xf32>
    %250 = vector.multi_reduction <add>, %249, %cst_119 [2] : vector<2x8x8xf32> to vector<2x8xf32>
    %251 = vector.shape_cast %250 : vector<2x8xf32> to vector<2x8x1xf32>
    %252 = tpu.reciprocal %251 {approx = true} : vector<2x8x1xf32> -> vector<2x8x1xf32>
    %253 = arith.truncf %249 : vector<2x8x8xf32> to vector<2x8x8xbf16>
    "tpu.trace_start"() <{level = 10 : i32, message = "bqk,bkd->bqd"}> : () -> ()
    %cst_120 = arith.constant dense<0.000000e+00> : vector<2x8x16xf32>
    %254 = tpu.matmul %253, %241, %cst_120 {dimension_numbers = #tpu.dot_dimension_numbers<[2], [1], [1], [2], [0, 0, 0, 1, 1, 2], [0], [0]>} : vector<2x8x8xbf16>, vector<2x8x16xbf16>, vector<2x8x16xf32> -> vector<2x8x16xf32>
    "tpu.trace_stop"() : () -> ()
    %255 = vector.broadcast %252 : vector<2x8x1xf32> to vector<2x8x16xf32>
    %256 = arith.mulf %254, %255 : vector<2x8x16xf32>
    %257 = vector.extract_strided_slice %235 {offsets = [0, 0, 16], sizes = [2, 8, 16], strides = [1, 1, 1]} : vector<2x8x192xf32> to vector<2x8x16xf32>
    %258 = arith.truncf %257 : vector<2x8x16xf32> to vector<2x8x16xbf16>
    %259 = vector.extract_strided_slice %235 {offsets = [0, 0, 80], sizes = [2, 8, 16], strides = [1, 1, 1]} : vector<2x8x192xf32> to vector<2x8x16xf32>
    %260 = arith.truncf %259 : vector<2x8x16xf32> to vector<2x8x16xbf16>
    %261 = vector.extract_strided_slice %235 {offsets = [0, 0, 144], sizes = [2, 8, 16], strides = [1, 1, 1]} : vector<2x8x192xf32> to vector<2x8x16xf32>
    %262 = arith.truncf %261 : vector<2x8x16xf32> to vector<2x8x16xbf16>
    "tpu.trace_start"() <{level = 10 : i32, message = "bqd,bkd->bqk"}> : () -> ()
    %cst_121 = arith.constant dense<0.000000e+00> : vector<2x8x8xf32>
    %263 = tpu.matmul %258, %260, %cst_121 {dimension_numbers = #tpu.dot_dimension_numbers<[2], [2], [1], [1], [0, 0, 0, 1, 1, 1], [0], [0]>} : vector<2x8x16xbf16>, vector<2x8x16xbf16>, vector<2x8x8xf32> -> vector<2x8x8xf32>
    "tpu.trace_stop"() : () -> ()
    %264 = vector.broadcast %1 : vector<2x1x8xf32> to vector<2x8x8xf32>
    %265 = arith.addf %263, %264 : vector<2x8x8xf32>
    %cst_122 = arith.constant dense<0xFF800000> : vector<2x8xf32>
    %266 = vector.multi_reduction <maximumf>, %265, %cst_122 [2] : vector<2x8x8xf32> to vector<2x8xf32>
    %267 = vector.shape_cast %266 : vector<2x8xf32> to vector<2x8x1xf32>
    %268 = vector.broadcast %267 : vector<2x8x1xf32> to vector<2x8x8xf32>
    %269 = arith.subf %265, %268 : vector<2x8x8xf32>
    %270 = math.exp %269 : vector<2x8x8xf32>
    %cst_123 = arith.constant dense<0.000000e+00> : vector<2x8xf32>
    %271 = vector.multi_reduction <add>, %270, %cst_123 [2] : vector<2x8x8xf32> to vector<2x8xf32>
    %272 = vector.shape_cast %271 : vector<2x8xf32> to vector<2x8x1xf32>
    %273 = tpu.reciprocal %272 {approx = true} : vector<2x8x1xf32> -> vector<2x8x1xf32>
    %274 = arith.truncf %270 : vector<2x8x8xf32> to vector<2x8x8xbf16>
    "tpu.trace_start"() <{level = 10 : i32, message = "bqk,bkd->bqd"}> : () -> ()
    %cst_124 = arith.constant dense<0.000000e+00> : vector<2x8x16xf32>
    %275 = tpu.matmul %274, %262, %cst_124 {dimension_numbers = #tpu.dot_dimension_numbers<[2], [1], [1], [2], [0, 0, 0, 1, 1, 2], [0], [0]>} : vector<2x8x8xbf16>, vector<2x8x16xbf16>, vector<2x8x16xf32> -> vector<2x8x16xf32>
    "tpu.trace_stop"() : () -> ()
    %276 = vector.broadcast %273 : vector<2x8x1xf32> to vector<2x8x16xf32>
    %277 = arith.mulf %275, %276 : vector<2x8x16xf32>
    %278 = vector.extract_strided_slice %235 {offsets = [0, 0, 32], sizes = [2, 8, 16], strides = [1, 1, 1]} : vector<2x8x192xf32> to vector<2x8x16xf32>
    %279 = arith.truncf %278 : vector<2x8x16xf32> to vector<2x8x16xbf16>
    %280 = vector.extract_strided_slice %235 {offsets = [0, 0, 96], sizes = [2, 8, 16], strides = [1, 1, 1]} : vector<2x8x192xf32> to vector<2x8x16xf32>
    %281 = arith.truncf %280 : vector<2x8x16xf32> to vector<2x8x16xbf16>
    %282 = vector.extract_strided_slice %235 {offsets = [0, 0, 160], sizes = [2, 8, 16], strides = [1, 1, 1]} : vector<2x8x192xf32> to vector<2x8x16xf32>
    %283 = arith.truncf %282 : vector<2x8x16xf32> to vector<2x8x16xbf16>
    "tpu.trace_start"() <{level = 10 : i32, message = "bqd,bkd->bqk"}> : () -> ()
    %cst_125 = arith.constant dense<0.000000e+00> : vector<2x8x8xf32>
    %284 = tpu.matmul %279, %281, %cst_125 {dimension_numbers = #tpu.dot_dimension_numbers<[2], [2], [1], [1], [0, 0, 0, 1, 1, 1], [0], [0]>} : vector<2x8x16xbf16>, vector<2x8x16xbf16>, vector<2x8x8xf32> -> vector<2x8x8xf32>
    "tpu.trace_stop"() : () -> ()
    %285 = vector.broadcast %1 : vector<2x1x8xf32> to vector<2x8x8xf32>
    %286 = arith.addf %284, %285 : vector<2x8x8xf32>
    %cst_126 = arith.constant dense<0xFF800000> : vector<2x8xf32>
    %287 = vector.multi_reduction <maximumf>, %286, %cst_126 [2] : vector<2x8x8xf32> to vector<2x8xf32>
    %288 = vector.shape_cast %287 : vector<2x8xf32> to vector<2x8x1xf32>
    %289 = vector.broadcast %288 : vector<2x8x1xf32> to vector<2x8x8xf32>
    %290 = arith.subf %286, %289 : vector<2x8x8xf32>
    %291 = math.exp %290 : vector<2x8x8xf32>
    %cst_127 = arith.constant dense<0.000000e+00> : vector<2x8xf32>
    %292 = vector.multi_reduction <add>, %291, %cst_127 [2] : vector<2x8x8xf32> to vector<2x8xf32>
    %293 = vector.shape_cast %292 : vector<2x8xf32> to vector<2x8x1xf32>
    %294 = tpu.reciprocal %293 {approx = true} : vector<2x8x1xf32> -> vector<2x8x1xf32>
    %295 = arith.truncf %291 : vector<2x8x8xf32> to vector<2x8x8xbf16>
    "tpu.trace_start"() <{level = 10 : i32, message = "bqk,bkd->bqd"}> : () -> ()
    %cst_128 = arith.constant dense<0.000000e+00> : vector<2x8x16xf32>
    %296 = tpu.matmul %295, %283, %cst_128 {dimension_numbers = #tpu.dot_dimension_numbers<[2], [1], [1], [2], [0, 0, 0, 1, 1, 2], [0], [0]>} : vector<2x8x8xbf16>, vector<2x8x16xbf16>, vector<2x8x16xf32> -> vector<2x8x16xf32>
    "tpu.trace_stop"() : () -> ()
    %297 = vector.broadcast %294 : vector<2x8x1xf32> to vector<2x8x16xf32>
    %298 = arith.mulf %296, %297 : vector<2x8x16xf32>
    %299 = vector.extract_strided_slice %235 {offsets = [0, 0, 48], sizes = [2, 8, 16], strides = [1, 1, 1]} : vector<2x8x192xf32> to vector<2x8x16xf32>
    %300 = arith.truncf %299 : vector<2x8x16xf32> to vector<2x8x16xbf16>
    %301 = vector.extract_strided_slice %235 {offsets = [0, 0, 112], sizes = [2, 8, 16], strides = [1, 1, 1]} : vector<2x8x192xf32> to vector<2x8x16xf32>
    %302 = arith.truncf %301 : vector<2x8x16xf32> to vector<2x8x16xbf16>
    %303 = vector.extract_strided_slice %235 {offsets = [0, 0, 176], sizes = [2, 8, 16], strides = [1, 1, 1]} : vector<2x8x192xf32> to vector<2x8x16xf32>
    %304 = arith.truncf %303 : vector<2x8x16xf32> to vector<2x8x16xbf16>
    "tpu.trace_start"() <{level = 10 : i32, message = "bqd,bkd->bqk"}> : () -> ()
    %cst_129 = arith.constant dense<0.000000e+00> : vector<2x8x8xf32>
    %305 = tpu.matmul %300, %302, %cst_129 {dimension_numbers = #tpu.dot_dimension_numbers<[2], [2], [1], [1], [0, 0, 0, 1, 1, 1], [0], [0]>} : vector<2x8x16xbf16>, vector<2x8x16xbf16>, vector<2x8x8xf32> -> vector<2x8x8xf32>
    "tpu.trace_stop"() : () -> ()
    %306 = vector.broadcast %1 : vector<2x1x8xf32> to vector<2x8x8xf32>
    %307 = arith.addf %305, %306 : vector<2x8x8xf32>
    %cst_130 = arith.constant dense<0xFF800000> : vector<2x8xf32>
    %308 = vector.multi_reduction <maximumf>, %307, %cst_130 [2] : vector<2x8x8xf32> to vector<2x8xf32>
    %309 = vector.shape_cast %308 : vector<2x8xf32> to vector<2x8x1xf32>
    %310 = vector.broadcast %309 : vector<2x8x1xf32> to vector<2x8x8xf32>
    %311 = arith.subf %307, %310 : vector<2x8x8xf32>
    %312 = math.exp %311 : vector<2x8x8xf32>
    %cst_131 = arith.constant dense<0.000000e+00> : vector<2x8xf32>
    %313 = vector.multi_reduction <add>, %312, %cst_131 [2] : vector<2x8x8xf32> to vector<2x8xf32>
    %314 = vector.shape_cast %313 : vector<2x8xf32> to vector<2x8x1xf32>
    %315 = tpu.reciprocal %314 {approx = true} : vector<2x8x1xf32> -> vector<2x8x1xf32>
    %316 = arith.truncf %312 : vector<2x8x8xf32> to vector<2x8x8xbf16>
    "tpu.trace_start"() <{level = 10 : i32, message = "bqk,bkd->bqd"}> : () -> ()
    %cst_132 = arith.constant dense<0.000000e+00> : vector<2x8x16xf32>
    %317 = tpu.matmul %316, %304, %cst_132 {dimension_numbers = #tpu.dot_dimension_numbers<[2], [1], [1], [2], [0, 0, 0, 1, 1, 2], [0], [0]>} : vector<2x8x8xbf16>, vector<2x8x16xbf16>, vector<2x8x16xf32> -> vector<2x8x16xf32>
    "tpu.trace_stop"() : () -> ()
    %318 = vector.broadcast %315 : vector<2x8x1xf32> to vector<2x8x16xf32>
    %319 = arith.mulf %317, %318 : vector<2x8x16xf32>
    %320 = tpu.concatenate %256, %277, %298, %319 in 2 : vector<2x8x16xf32>, vector<2x8x16xf32>, vector<2x8x16xf32>, vector<2x8x16xf32> -> vector<2x8x64xf32>
    %321 = vector.shape_cast %320 : vector<2x8x64xf32> to vector<16x64xf32>
    %322 = arith.truncf %321 : vector<16x64xf32> to vector<16x64xbf16>
    %cst_133 = arith.constant dense<0.000000e+00> : vector<16x64xf32>
    %323 = tpu.matmul %322, %212, %cst_133 {dimension_numbers = #tpu.dot_dimension_numbers<[1], [0], [0], [1], [0, 0, 1, 1], [], []>} : vector<16x64xbf16>, vector<64x64xbf16>, vector<16x64xf32> -> vector<16x64xf32>
    %324 = vector.broadcast %214 : vector<1x64xf32> to vector<16x64xf32>
    %325 = arith.addf %323, %324 : vector<16x64xf32>
    %326 = arith.addf %206, %325 : vector<16x64xf32>
    %cst_134 = arith.constant dense<0.000000e+00> : vector<16xf32>
    %327 = vector.multi_reduction <add>, %326, %cst_134 [1] : vector<16x64xf32> to vector<16xf32>
    %328 = vector.shape_cast %327 : vector<16xf32> to vector<16x1xf32>
    %cst_135 = arith.constant 6.400000e+01 : f32
    %329 = vector.broadcast %cst_135 : f32 to vector<16x1xf32>
    %330 = arith.divf %328, %329 : vector<16x1xf32>
    %331 = vector.broadcast %330 : vector<16x1xf32> to vector<16x64xf32>
    %332 = arith.subf %326, %331 : vector<16x64xf32>
    %333 = arith.mulf %332, %332 : vector<16x64xf32>
    %cst_136 = arith.constant dense<0.000000e+00> : vector<16xf32>
    %334 = vector.multi_reduction <add>, %333, %cst_136 [1] : vector<16x64xf32> to vector<16xf32>
    %335 = vector.shape_cast %334 : vector<16xf32> to vector<16x1xf32>
    %cst_137 = arith.constant 6.400000e+01 : f32
    %336 = vector.broadcast %cst_137 : f32 to vector<16x1xf32>
    %337 = arith.divf %335, %336 : vector<16x1xf32>
    %cst_138 = arith.constant 9.99999996E-13 : f32
    %338 = vector.broadcast %cst_138 : f32 to vector<16x1xf32>
    %339 = arith.addf %337, %338 : vector<16x1xf32>
    %340 = math.rsqrt %339 : vector<16x1xf32>
    %341 = vector.broadcast %340 : vector<16x1xf32> to vector<16x64xf32>
    %342 = arith.mulf %332, %341 : vector<16x64xf32>
    %343 = vector.broadcast %216 : vector<1x64xf32> to vector<16x64xf32>
    %344 = arith.mulf %342, %343 : vector<16x64xf32>
    %345 = vector.broadcast %218 : vector<1x64xf32> to vector<16x64xf32>
    %346 = arith.addf %344, %345 : vector<16x64xf32>
    %347 = arith.truncf %346 : vector<16x64xf32> to vector<16x64xbf16>
    %cst_139 = arith.constant dense<0.000000e+00> : vector<16x128xf32>
    %348 = tpu.matmul %347, %220, %cst_139 {dimension_numbers = #tpu.dot_dimension_numbers<[1], [0], [0], [1], [0, 0, 1, 1], [], []>} : vector<16x64xbf16>, vector<64x128xbf16>, vector<16x128xf32> -> vector<16x128xf32>
    %349 = vector.broadcast %222 : vector<1x128xf32> to vector<16x128xf32>
    %350 = arith.addf %348, %349 : vector<16x128xf32>
    %cst_140 = arith.constant 5.000000e-01 : f32
    %351 = vector.broadcast %cst_140 : f32 to vector<16x128xf32>
    %352 = arith.mulf %351, %350 : vector<16x128xf32>
    %cst_141 = arith.constant 4.471500e-02 : f32
    %353 = vector.broadcast %cst_141 : f32 to vector<16x128xf32>
    %354 = arith.mulf %353, %350 : vector<16x128xf32>
    %355 = arith.mulf %354, %350 : vector<16x128xf32>
    %356 = arith.mulf %355, %350 : vector<16x128xf32>
    %357 = arith.addf %350, %356 : vector<16x128xf32>
    %cst_142 = arith.constant 0.797884583 : f32
    %358 = vector.broadcast %cst_142 : f32 to vector<16x128xf32>
    %359 = arith.mulf %358, %357 : vector<16x128xf32>
    %360 = math.tanh %359 : vector<16x128xf32>
    %cst_143 = arith.constant 1.000000e+00 : f32
    %361 = vector.broadcast %cst_143 : f32 to vector<16x128xf32>
    %362 = arith.addf %361, %360 : vector<16x128xf32>
    %363 = arith.mulf %352, %362 : vector<16x128xf32>
    %364 = arith.truncf %363 : vector<16x128xf32> to vector<16x128xbf16>
    %cst_144 = arith.constant dense<0.000000e+00> : vector<16x64xf32>
    %365 = tpu.matmul %364, %224, %cst_144 {dimension_numbers = #tpu.dot_dimension_numbers<[1], [0], [0], [1], [0, 0, 1, 1], [], []>} : vector<16x128xbf16>, vector<128x64xbf16>, vector<16x64xf32> -> vector<16x64xf32>
    %366 = vector.broadcast %226 : vector<1x64xf32> to vector<16x64xf32>
    %367 = arith.addf %365, %366 : vector<16x64xf32>
    %368 = arith.addf %346, %367 : vector<16x64xf32>
    %cst_145 = arith.constant dense<0.000000e+00> : vector<16xf32>
    %369 = vector.multi_reduction <add>, %368, %cst_145 [1] : vector<16x64xf32> to vector<16xf32>
    %370 = vector.shape_cast %369 : vector<16xf32> to vector<16x1xf32>
    %cst_146 = arith.constant 6.400000e+01 : f32
    %371 = vector.broadcast %cst_146 : f32 to vector<16x1xf32>
    %372 = arith.divf %370, %371 : vector<16x1xf32>
    %373 = vector.broadcast %372 : vector<16x1xf32> to vector<16x64xf32>
    %374 = arith.subf %368, %373 : vector<16x64xf32>
    %375 = arith.mulf %374, %374 : vector<16x64xf32>
    %cst_147 = arith.constant dense<0.000000e+00> : vector<16xf32>
    %376 = vector.multi_reduction <add>, %375, %cst_147 [1] : vector<16x64xf32> to vector<16xf32>
    %377 = vector.shape_cast %376 : vector<16xf32> to vector<16x1xf32>
    %cst_148 = arith.constant 6.400000e+01 : f32
    %378 = vector.broadcast %cst_148 : f32 to vector<16x1xf32>
    %379 = arith.divf %377, %378 : vector<16x1xf32>
    %cst_149 = arith.constant 9.99999996E-13 : f32
    %380 = vector.broadcast %cst_149 : f32 to vector<16x1xf32>
    %381 = arith.addf %379, %380 : vector<16x1xf32>
    %382 = math.rsqrt %381 : vector<16x1xf32>
    %383 = vector.broadcast %382 : vector<16x1xf32> to vector<16x64xf32>
    %384 = arith.mulf %374, %383 : vector<16x64xf32>
    %385 = vector.broadcast %228 : vector<1x64xf32> to vector<16x64xf32>
    %386 = arith.mulf %384, %385 : vector<16x64xf32>
    %387 = vector.broadcast %230 : vector<1x64xf32> to vector<16x64xf32>
    %388 = arith.addf %386, %387 : vector<16x64xf32>
    %389 = vector.shape_cast %388 : vector<16x64xf32> to vector<2x8x64xf32>
    %390 = vector.extract_strided_slice %389 {offsets = [0, 0, 0], sizes = [2, 1, 64], strides = [1, 1, 1]} : vector<2x8x64xf32> to vector<2x1x64xf32>
    %391 = vector.shape_cast %390 : vector<2x1x64xf32> to vector<2x64xf32>
    %392 = arith.truncf %391 : vector<2x64xf32> to vector<2x64xbf16>
    %c0_150 = arith.constant 0 : index
    %c0_151 = arith.constant 0 : index
    %393 = vector.load %arg16[%c0_150, %c0_151] : memref<64x128xbf16, #tpu.memory_space<vmem>>, vector<64x128xbf16>
    %cst_152 = arith.constant dense<0.000000e+00> : vector<2x128xf32>
    %394 = tpu.matmul %392, %393, %cst_152 {dimension_numbers = #tpu.dot_dimension_numbers<[1], [0], [0], [1], [0, 0, 1, 1], [], []>} : vector<2x64xbf16>, vector<64x128xbf16>, vector<2x128xf32> -> vector<2x128xf32>
    %c0_153 = arith.constant 0 : index
    %c0_154 = arith.constant 0 : index
    %395 = vector.load %arg17[%c0_153, %c0_154] : memref<1x128xf32, #tpu.memory_space<vmem>>, vector<1x128xf32>
    %396 = vector.broadcast %395 : vector<1x128xf32> to vector<2x128xf32>
    %397 = arith.addf %394, %396 : vector<2x128xf32>
    %cst_155 = arith.constant 0.000000e+00 : f32
    %398 = vector.broadcast %cst_155 : f32 to vector<6x128xf32>
    %399 = tpu.concatenate %397, %398 in 0 : vector<2x128xf32>, vector<6x128xf32> -> vector<8x128xf32>
    %c0_156 = arith.constant 0 : index
    %c0_157 = arith.constant 0 : index
    %400 = vector.load %arg18[%c0_156, %c0_157] : memref<8x128xf32, #tpu.memory_space<vmem>>, vector<8x128xf32>
    tpu.vector_store %arg18[%c0_156, %c0_157], %399 {strides = array<i32>} : memref<8x128xf32, #tpu.memory_space<vmem>>, vector<8x128xf32>,
    return
  }
}

</mosaic_0001>

<bundles_post_ra>
// kernel: distilbert_classifier_forward.1
= control target key start
LH: loop header
LB: loop body
LE: loop exit
PB: predicated region body
PF: predicated region fallthrough
CT: control target
= control target key end

     0   :  { %vm88_vm0 = vcmask 523264   ;;  %v3823_v22 = vmov 0   ;;  %v73_v40 = vlaneseq  ;;  %v3824_v42 = vmov 0.0   ;;  %s3826_s26 = smov 64   ;;  %s3830_s30 = smov 32   ;;  %s4690_s0 = inlined_call_operand.vmem [shape: f32[16,64], index: 0, kind: input, shape index: {}]   ;;  %s4691_s4 = inlined_call_operand.vmem [shape: bf16[2,64,192], index: 4, kind: input, shape index: {}]   ;;  %s4692_s2 = inlined_call_operand.vmem [shape: f32[1,64], index: 2, kind: input, shape index: {}]   ;;  %s4693_s3 = inlined_call_operand.vmem [shape: f32[1,64], index: 3, kind: input, shape index: {}]   ;;  %s4694_s5 = inlined_call_operand.vmem [shape: f32[2,1,192], index: 5, kind: input, shape index: {}]   ;;  %s4695_s1 = inlined_call_operand.vmem [shape: f32[2,8], index: 1, kind: input, shape index: {}]   ;;  %s4696_s6 = inlined_call_operand.vmem [shape: bf16[2,64,64], index: 6, kind: input, shape index: {}]   ;;  %s4697_s7 = inlined_call_operand.vmem [shape: f32[2,1,64], index: 7, kind: input, shape index: {}]   ;;  %s4698_s10 = inlined_call_operand.vmem [shape: bf16[2,64,128], index: 10, kind: input, shape index: {}]   ;;  %s4699_s8 = inlined_call_operand.vmem [shape: f32[2,1,64], index: 8, kind: input, shape index: {}]   ;;  %s4700_s9 = inlined_call_operand.vmem [shape: f32[2,1,64], index: 9, kind: input, shape index: {}]   ;;  %s4701_s12 = inlined_call_operand.vmem [shape: bf16[2,128,64], index: 12, kind: input, shape index: {}]   ;;  %s4702_s11 = inlined_call_operand.vmem [shape: f32[2,1,128], index: 11, kind: input, shape index: {}]   ;;  %s4703_s13 = inlined_call_operand.vmem [shape: f32[2,1,64], index: 13, kind: input, shape index: {}]   ;;  %s4704_s14 = inlined_call_operand.vmem [shape: f32[2,1,64], index: 14, kind: input, shape index: {}]   ;;  %s4705_s15 = inlined_call_operand.vmem [shape: f32[2,1,64], index: 15, kind: input, shape index: {}]   ;;  %s4706_s16 = inlined_call_operand.vmem [shape: bf16[64,128], index: 16, kind: input, shape index: {}]   ;;  %s4707_s17 = inlined_call_operand.vmem [shape: f32[1,128], index: 17, kind: input, shape index: {}]   ;;  %s4708_s18 = inlined_call_operand.vmem [shape: f32[8,128], index: 18, kind: output, shape index: {}]  }
   0x1   :  { %4713 = sst [smem:[#allocation2_spill]] %s4690_s0  ;;  %267 = vmatprep.mubr.bf16.mxu0 %v3823_v22  ;;  %v3076_v35 = vld [vmem:[%s4693_s3] ss:$0 sm:$0xff]  ;;  %3338 = vmatprep.subr.bf16.mxu1 %v3824_v42  ;;  %vm3825_vm1 = vmmov 0   ;;  %vm295_vm2 = vcmask 130048   ;;  %vm417_vm3 = vcmask 1043456  }
   0x2   :  { %4714 = sst [smem:[#allocation3_spill]] %s4691_s4  ;;  %s4716_s29 = sld [smem:[#allocation2_spill]]  ;;  %v3977_v41 = vshrl.u32 %v73_v40, 7  ;;  %v140_v44 = vld [vmem:[%s4694_s5] sm:$0x3]  ;;  %3340 = vmatprep.mubr.msk.bf16.mxu1 %vm3825_vm1, %v3824_v42  ;;  %vm391_vm4 = vcmask 64512  }
   0x3   :  { %4715 = sst [smem:[#allocation4_spill]] %s4692_s2  ;;  %s4717_s20 = sld [smem:[#allocation3_spill]]  ;;  %vm1197_vm5 = vcmask 261120   ;;  %vm1200_vm6 = vcmask 392192   ;;  %vm2997_vm7 = vcmask 1041409   ;;  %vm3067_vm8 = vcmask 1041408  }
   0x4   :  { %s4718_s2 = sld [smem:[#allocation4_spill]]  ;;  %v3982_v43 = vsub.s32 0, %v3977_v41  ;;  %v188_v46 = vsub.s32 1, %v3977_v41  ;;  %s3831_s0 = smov 96  }
   0x5   :  { %s3832_s19 = smov 16   ;;  %s4711_s4 = smov 80  }
   0x6   :  { %v185_v45 = vrot.slane %v140_v44, %v3982_v43  ;;  %v189_v50 = vrot.slane %v140_v44, %v188_v46 }
   0x8   :  { %v84_v0 = vld [vmem:[%s4716_s29] sm:$0xff]  ;;  %v85_v1 = vld [vmem:[%s4716_s29 + $0x8] sm:$0xff]  ;;  %s3829_s29 = smov 112  }
   0x9   :  { %v89_v2 = vsel %vm88_vm0, %v84_v0, 0.0  ;;  %v92_v3 = vsel %vm88_vm0, %v85_v1, 0.0  ;;  %v3671_v14 = vld [vmem:[%s4717_s20 + $0x4] ss:$8 sps:$4 sm:$0xff]   ;;  %v3673_v15 = vld [vmem:[%s4717_s20] ss:$8 sps:$4 sm:$0xff]  }
   0xa   :  { %90 = vadd.xlane.f32.xlu0 %v89_v2  ;;  %235 = vmatprep.subr.bf16.mxu0 %v3671_v14  ;;  %v3674_v16 = vld [vmem:[%s4717_s20 + $0x14] ss:$8 sps:$4 sm:$0xff]   ;;  %v3676_v17 = vld [vmem:[%s4717_s20 + $0x10] ss:$8 sps:$4 sm:$0xff]   ;;  %v3677_v18 = vld [vmem:[%s4717_s20 + $0x24] ss:$8 sps:$4 sm:$0xff]  }
   0xb   :  { %236 = vmatpush1.bf16.msra.mxu0 %v3673_v15  ;;  %v3679_v19 = vld [vmem:[%s4717_s20 + $0x20] ss:$8 sps:$4 sm:$0xff]   ;;  %v3680_v20 = vld [vmem:[%s4717_s20 + $0x34] ss:$8 sps:$4 sm:$0xff]   ;;  %v3682_v21 = vld [vmem:[%s4717_s20 + $0x30] ss:$8 sps:$4 sm:$0xff]  }
   0xc   :  { %237 = vmatprep.subr.bf16.mxu0 %v3674_v16  ;;  %v3075_v31 = vld [vmem:[%s4718_s2] ss:$0 sm:$0xff] }
   0xe   :  { %93 = vadd.xlane.f32.xlu0 %v92_v3 }
   0xf   :  { %238 = vmatpush1.bf16.msra.mxu0 %v3676_v17 }
  0x10   :  { %239 = vmatprep.subr.bf16.mxu0 %v3677_v18 }
  0x13   :  { %240 = vmatpush1.bf16.msra.mxu0 %v3679_v19 }
  0x14   :  { %241 = vmatprep.subr.bf16.mxu0 %v3680_v20 }
  0x17   :  { %242 = vmatpush1.bf16.msra.mxu0 %v3682_v21 }
  0x18   :  { %3362 = vmatprep.subr.bf16.mxu0 %v3824_v42 }
  0x97   :  { %v91_v4 = vpop.xlane.xlu0 %90 }
  0x98   :  { %v96_v5 = vmul.f32 0.015625, %v91_v4  ;;  %v3074_v4 = vld.sshfl [vmem:[%s4695_s1] sm:$0x11 pattern:$0x75316420]  ;;  %s3828_s1 = smov 48  }
  0x9a   :  { %v98_v6 = vsub.f32 %v84_v0, %v96_v5  ;;  %v3827_v0 = vmov 1966171168  }
  0x9b   :  { %v94_v7 = vpop.xlane.xlu0 %93 }
  0x9c   :  { %v97_v8 = vmul.f32 0.015625, %v94_v7  ;;  %v100_v9 = vmul.f32 %v98_v6, %v98_v6 }
  0x9e   :  { %v99_v10 = vsub.f32 %v85_v1, %v97_v8  ;;  %v102_v11 = vsel %vm88_vm0, %v100_v9, 0.0  ;;  %v71_v1 = vunpack.c.l.s4 %v3827_v0 }
  0x9f   :  { %103 = vadd.xlane.f32.xlu1 %v102_v11 }
  0xa0   :  { %v101_v12 = vmul.f32 %v99_v10, %v99_v10  ;;  %v72_v2 = vunpack.c.0.s8 %v71_v1 }
  0xa2   :  { %v105_v13 = vsel %vm88_vm0, %v101_v12, 0.0  ;;  %v75_v3 = vsub.s32 %v72_v2, %v3977_v41 }
  0xa3   :  { %106 = vadd.xlane.f32.xlu1 %v105_v13 }
  0xa4   :  { %v76_v5 = vrot.slane %v3074_v4, %v75_v3 }
  0xa6   :  { %v4025_v7 = vrot.slane %v76_v5, %v3982_v43 }
 0x12c   :  { %v104_v23 = vpop.xlane.xlu1 %103 }
 0x12d   :  { %v108_v24 = vmul.f32 0.015625, %v104_v23 }
 0x12f   :  { %v110_v25 = vadd.f32 1e-12, %v108_v24 }
 0x130   :  { %v107_v26 = vpop.xlane.xlu1 %106 }
 0x131   :  { %3731 = vrsqrt.f32 %v110_v25  ;;  %v109_v27 = vmul.f32 0.015625, %v107_v26 }
 0x133   :  { %v111_v28 = vadd.f32 1e-12, %v109_v27 }
 0x135   :  { %3733 = vrsqrt.f32 %v111_v28 }
 0x13b   :  { %v3732_v29 = vpop.eup %3731 }
 0x13c   :  { %v114_v30 = vmul.f32 %v3732_v29, %v98_v6  ;;  %v69_v6 = vcombine.high %v3074_v4, %v3074_v4 }
 0x13e   :  { %v122_v34 = vmul.f32 %v3075_v31, %v114_v30  ;;  %v83_v9 = vrot.slane %v69_v6, %v75_v3 }
 0x13f   :  { %v3734_v32 = vpop.eup %3733 }
 0x140   :  { %v115_v33 = vmul.f32 %v3734_v32, %v99_v10  ;;  %v3970_v37 = vadd.f32 %v3076_v35, %v122_v34  ;;  %v4030_v15 = vrot.slane %v83_v9, %v3982_v43 }
 0x142   :  { %v123_v36 = vmul.f32 %v3075_v31, %v115_v33 }
 0x144   :  { %v3972_v38 = vadd.f32 %v3076_v35, %v123_v36 }
 0x146   :  { %v180_v39 = vpack.c.bf16 %v3972_v38, %v3970_v37 }
 0x148   :  { %3085 = vmatmul.mubr.msk.bf16.vlgmr.msra.gmra.mrb[0].mxu0 %vm88_vm0, %v180_v39 }
 0x149   :  { %3364 = vmatprep.mubr.msk.bf16.mxu0 %vm3825_vm1, %v3824_v42 }
 0x21b   :  { %v269_v47 = vpop.f32.mrb[0].mxu0 }
 0x21c   :  { %v270_v48 = vadd.f32 %v269_v47, %v185_v45  ;;  %v271_v49 = vpop.f32.mrb[1].mxu0 }
 0x21d   :  { %v273_v51 = vpop.f32.mrb[2].mxu0  ;;  %v272_v60 = vadd.f32 %v271_v49, %v189_v50 }
 0x21e   :  { %v3995_v52 = vpack.c.bf16 %v270_v48, %v270_v48  ;;  %v274_v53 = vadd.f32 %v273_v51, %v185_v45  ;;  %v275_v54 = vpop.f32.mrb[3].mxu0 }
 0x21f   :  { %v276_v55 = vadd.f32 %v275_v54, %v189_v50  ;;  %v4011_v62 = vpack.c.bf16 %v272_v60, %v272_v60 }
 0x220   :  { %v3997_v56 = vpack.c.bf16 %v274_v53, %v274_v53  ;;  %293 = vrot.lane.b32.xlu0 %v3995_v52, %s3826_s26 }
 0x221   :  { %v419_v63 = vsel %vm417_vm3, %v4011_v62, 0  ;;  %v4040_v23 = vpack.c.bf16 %v276_v55, %v276_v55 }
 0x222   :  { %343 = vrot.lane.b32.xlu1 %v3997_v56, %s3826_s26 }
 0x223   :  { %v465_v35 = vsel %vm417_vm3, %v4040_v23, 0 }
 0x292   :  { %v294_v57 = vpop.permute.xlu0 %293 }
 0x293   :  { %v300_v58 = vsel %vm295_vm2, %v294_v57, 0 }
 0x294   :  { %3339 = vmatpush3.bf16.xpose.msra.mxu1 %v300_v58  ;;  %v344_v59 = vpop.permute.xlu1 %343 }
 0x295   :  { %3344 = vmatprep.subr.bf16.mxu1 %v3824_v42  ;;  %v349_v61 = vsel %vm295_vm2, %v344_v59, 0 }
 0x29b   :  { %3341 = vmatmul.mubr.msk.bf16.vlgmr.msra.gmra.mrb[0].mxu1 %vm295_vm2, %v3995_v52 }
 0x29c   :  { %3345 = vmatpush3.bf16.xpose.msra.mxu1 %v349_v61  ;;  %3346 = vmatprep.mubr.msk.bf16.mxu1 %vm3825_vm1, %v3824_v42 }
 0x29d   :  { %3350 = vmatprep.subr.bf16.mxu1 %v3824_v42 }
 0x2a3   :  { %3347 = vmatmul.mubr.msk.bf16.vlgmr.msra.gmra.mrb[4].mxu1 %vm295_vm2, %v3997_v56 }
 0x2a4   :  { %3351 = vmatpush3.bf16.msra.mxu1 %v419_v63  ;;  %3352 = vmatprep.mubr.msk.bf16.mxu1 %vm3825_vm1, %v3824_v42 }
 0x2a5   :  { %3356 = vmatprep.subr.bf16.mxu1 %v3824_v42 }
 0x36e   :  { %v336_v8 = vpop.f32.mrb[0].mxu1 }
 0x36f   :  { %v337_v10 = vadd.f32 %v336_v8, %v4025_v7  ;;  %v3342_v11 = vpop.f32.mrb[1].mxu1 }
 0x370   :  { %v339_v12 = vpop.f32.mrb[2].mxu1 }
 0x371   :  { %v3343_v13 = vpop.f32.mrb[3].mxu1  ;;  %v392_v14 = vsel %vm391_vm4, %v337_v10, -inf }
 0x372   :  { %393 = vmax.xlane.f32.xlu1 %v392_v14 }
 0x376   :  { %v385_v16 = vpop.f32.mrb[4].mxu1 }
 0x377   :  { %v386_v17 = vadd.f32 %v385_v16, %v4030_v15  ;;  %v3348_v18 = vpop.f32.mrb[5].mxu1 }
 0x378   :  { %v388_v19 = vpop.f32.mrb[6].mxu1 }
 0x379   :  { %v3349_v20 = vpop.f32.mrb[7].mxu1  ;;  %v395_v21 = vsel %vm391_vm4, %v386_v17, -inf }
 0x37a   :  { %396 = vmax.xlane.f32.xlu0 %v395_v21 }
 0x383   :  { %561 = vrot.lane.b32.xlu1 %v3997_v56, %s3828_s1 }
 0x387   :  { %509 = vrot.lane.b32.xlu1 %v3995_v52, %s3829_s29 }
 0x38b   :  { %559 = vrot.lane.b32.xlu1 %v3997_v56, %s3829_s29 }
 0x38f   :  { %681 = vrot.lane.b32.xlu1 %v4040_v23, %s3829_s29 }
 0x390   :  { %511 = vrot.lane.b32.xlu0 %v3995_v52, %s3828_s1 }
 0x3ff   :  { %v394_v24 = vpop.xlane.xlu1 %393 }
 0x400   :  { %v398_v25 = vsub.f32 %v337_v10, %v394_v24 }
 0x402   :  { %v400_v26 = vmul.f32 1.442695, %v398_v25 }
 0x403   :  { %v562_v32 = vpop.permute.xlu1 %561 }
 0x404   :  { %3735 = vpow2.f32 %v400_v26  ;;  %v567_v45 = vsel %vm295_vm2, %v562_v32, 0 }
 0x407   :  { %v397_v27 = vpop.xlane.xlu0 %396  ;;  %v510_v36 = vpop.permute.xlu1 %509 }
 0x408   :  { %v399_v28 = vsub.f32 %v386_v17, %v397_v27 }
 0x40a   :  { %v402_v29 = vmul.f32 1.442695, %v399_v28 }
 0x40b   :  { %v512_v30 = vpop.permute.xlu0 %511  ;;  %v560_v44 = vpop.permute.xlu1 %559 }
 0x40c   :  { %3737 = vpow2.f32 %v402_v29  ;;  %v517_v31 = vsel %vm295_vm2, %v512_v30, 0 }
 0x40d   :  { %3363 = vmatpush3.bf16.xpose.msra.mxu0 %v517_v31 }
 0x40e   :  { %v4047_v33 = vpop.eup %3735  ;;  %3374 = vmatprep.subr.bf16.mxu0 %v3824_v42 }
 0x40f   :  { %v412_v34 = vpack.c.bf16 %v4047_v33, %v4047_v33  ;;  %v682_v47 = vpop.permute.xlu1 %681 }
 0x410   :  { %v687_v48 = vsel %vm417_vm3, %v682_v47, 0 }
 0x411   :  { %3353 = vmatmul.mubr.msk.bf16.vlgmr.msra.gmra.mrb[8].mxu1 %vm391_vm4, %v412_v34 }
 0x412   :  { %3357 = vmatpush3.bf16.msra.mxu1 %v465_v35  ;;  %3358 = vmatprep.mubr.msk.bf16.mxu1 %vm3825_vm1, %v3824_v42 }
 0x413   :  { %3368 = vmatprep.subr.bf16.mxu1 %v3824_v42 }
 0x414   :  { %3365 = vmatmul.mubr.msk.bf16.vlgmr.msra.gmra.mrb[4].mxu0 %vm295_vm2, %v510_v36 }
 0x415   :  { %3376 = vmatprep.mubr.msk.bf16.mxu0 %vm3825_vm1, %v3824_v42 }
 0x416   :  { %v4061_v39 = vpop.eup %3737 }
 0x417   :  { %v413_v40 = vpack.c.bf16 %v4061_v39, %v4061_v39 }
 0x419   :  { %3359 = vmatmul.mubr.msk.bf16.vlgmr.msra.gmra.mrb[12].mxu1 %vm391_vm4, %v413_v40 }
 0x41a   :  { %3370 = vmatprep.mubr.msk.bf16.mxu1 %vm3825_vm1, %v3824_v42 }
 0x41b   :  { %3369 = vmatpush3.bf16.xpose.msra.mxu1 %v567_v45 }
 0x41c   :  { %3380 = vmatprep.subr.bf16.mxu1 %v3824_v42 }
 0x422   :  { %3371 = vmatmul.mubr.msk.bf16.vlgmr.msra.gmra.mrb[16].mxu1 %vm295_vm2, %v560_v44 }
 0x423   :  { %3381 = vmatpush3.bf16.msra.mxu1 %v687_v48  ;;  %3382 = vmatprep.mubr.msk.bf16.mxu1 %vm3825_vm1, %v3824_v42 }
 0x424   :  { %3392 = vmatprep.subr.bf16.mxu1 %v3824_v42 }
 0x4e4   :  { %v4075_v49 = vpop.f32.mrb[8].mxu1 }
 0x4e5   :  { %v3354_v50 = vpop.f32.mrb[9].mxu1 }
 0x4e6   :  { %v458_v51 = vpop.f32.mrb[10].mxu1 }
 0x4e7   :  { %v3355_v53 = vpop.f32.mrb[11].mxu1  ;;  %v553_v54 = vpop.f32.mrb[4].mxu0 }
 0x4e8   :  { %v554_v55 = vadd.f32 %v553_v54, %v4025_v7  ;;  %v3366_v57 = vpop.f32.mrb[5].mxu0 }
 0x4e9   :  { %v556_v58 = vpop.f32.mrb[6].mxu0 }
 0x4ea   :  { %v3367_v59 = vpop.f32.mrb[7].mxu0  ;;  %v609_v60 = vsel %vm391_vm4, %v554_v55, -inf }
 0x4eb   :  { %610 = vmax.xlane.f32.xlu0 %v609_v60 }
 0x4ec   :  { %v4079_v61 = vpop.f32.mrb[12].mxu1 }
 0x4ed   :  { %v3360_v63 = vpop.f32.mrb[13].mxu1 }
 0x4ee   :  { %v504_v0 = vpop.f32.mrb[14].mxu1 }
 0x4ef   :  { %v3361_v1 = vpop.f32.mrb[15].mxu1 }
 0x4f5   :  { %v603_v2 = vpop.f32.mrb[16].mxu1 }
 0x4f6   :  { %v604_v3 = vadd.f32 %v603_v2, %v4030_v15  ;;  %v3372_v4 = vpop.f32.mrb[17].mxu1 }
 0x4f7   :  { %v606_v5 = vpop.f32.mrb[18].mxu1 }
 0x4f8   :  { %v3373_v6 = vpop.f32.mrb[19].mxu1  ;;  %v612_v8 = vsel %vm391_vm4, %v604_v3, -inf }
 0x4f9   :  { %613 = vmax.xlane.f32.xlu1 %v612_v8 }
 0x501   :  { %632 = vrot.lane.b32.xlu0 %v4011_v62, %s3829_s29 }
 0x505   :  { %733 = vrot.lane.b32.xlu0 %v3995_v52, %s3830_s30 }
 0x509   :  { %731 = vrot.lane.b32.xlu0 %v3995_v52, %s3831_s0 }
 0x50a   :  { %783 = vrot.lane.b32.xlu1 %v3997_v56, %s3830_s30 }
 0x50e   :  { %781 = vrot.lane.b32.xlu1 %v3997_v56, %s3831_s0 }
 0x512   :  { %901 = vrot.lane.b32.xlu1 %v4040_v23, %s3831_s0 }
 0x578   :  { %v611_v9 = vpop.xlane.xlu0 %610 }
 0x579   :  { %v615_v10 = vsub.f32 %v554_v55, %v611_v9 }
 0x57b   :  { %v617_v11 = vmul.f32 1.442695, %v615_v10 }
 0x57c   :  { %v633_v12 = vpop.permute.xlu0 %632 }
 0x57d   :  { %3739 = vpow2.f32 %v617_v11  ;;  %v638_v13 = vsel %vm417_vm3, %v633_v12, 0 }
 0x57e   :  { %3375 = vmatpush3.bf16.msra.mxu0 %v638_v13 }
 0x57f   :  { %3386 = vmatprep.subr.bf16.mxu0 %v3824_v42 }
 0x580   :  { %v734_v17 = vpop.permute.xlu0 %733 }
 0x581   :  { %v739_v21 = vsel %vm295_vm2, %v734_v17, 0 }
 0x584   :  { %v732_v24 = vpop.permute.xlu0 %731 }
 0x586   :  { %v614_v14 = vpop.xlane.xlu1 %613 }
 0x587   :  { %v4097_v16 = vpop.eup %3739  ;;  %v616_v18 = vsub.f32 %v604_v3, %v614_v14 }
 0x588   :  { %v629_v19 = vpack.c.bf16 %v4097_v16, %v4097_v16 }
 0x589   :  { %v619_v20 = vmul.f32 1.442695, %v616_v18 }
 0x58a   :  { %3377 = vmatmul.mubr.msk.bf16.vlgmr.msra.gmra.mrb[8].mxu0 %vm391_vm4, %v629_v19  ;;  %v784_v25 = vpop.permute.xlu1 %783 }
 0x58b   :  { %3741 = vpow2.f32 %v619_v20  ;;  %3387 = vmatpush3.bf16.xpose.msra.mxu0 %v739_v21  ;;  %3388 = vmatprep.mubr.msk.bf16.mxu0 %vm3825_vm1, %v3824_v42  ;;  %v789_v29 = vsel %vm295_vm2, %v784_v25, 0 }
 0x58c   :  { %3398 = vmatprep.subr.bf16.mxu0 %v3824_v42 }
 0x58e   :  { %v782_v28 = vpop.permute.xlu1 %781 }
 0x592   :  { %3389 = vmatmul.mubr.msk.bf16.vlgmr.msra.gmra.mrb[12].mxu0 %vm295_vm2, %v732_v24  ;;  %v902_v30 = vpop.permute.xlu1 %901 }
 0x593   :  { %3400 = vmatprep.mubr.msk.bf16.mxu0 %vm3825_vm1, %v3824_v42  ;;  %v907_v31 = vsel %vm417_vm3, %v902_v30, 0 }
 0x595   :  { %v4109_v26 = vpop.eup %3741 }
 0x596   :  { %v630_v27 = vpack.c.bf16 %v4109_v26, %v4109_v26 }
 0x598   :  { %3383 = vmatmul.mubr.msk.bf16.vlgmr.msra.gmra.mrb[20].mxu1 %vm391_vm4, %v630_v27 }
 0x599   :  { %3393 = vmatpush3.bf16.xpose.msra.mxu1 %v789_v29  ;;  %3394 = vmatprep.mubr.msk.bf16.mxu1 %vm3825_vm1, %v3824_v42 }
 0x59a   :  { %3404 = vmatprep.subr.bf16.mxu1 %v3824_v42 }
 0x5a0   :  { %3395 = vmatmul.mubr.msk.bf16.vlgmr.msra.gmra.mrb[24].mxu1 %vm295_vm2, %v782_v28 }
 0x5a1   :  { %3405 = vmatpush3.bf16.msra.mxu1 %v907_v31  ;;  %3406 = vmatprep.mubr.msk.bf16.mxu1 %vm3825_vm1, %v3824_v42 }
 0x5a2   :  { %3416 = vmatprep.subr.bf16.mxu1 %v3824_v42 }
 0x65d   :  { %v4123_v32 = vpop.f32.mrb[8].mxu0 }
 0x65e   :  { %v3378_v34 = vpop.f32.mrb[9].mxu0 }
 0x65f   :  { %v677_v35 = vpop.f32.mrb[10].mxu0 }
 0x660   :  { %v3379_v36 = vpop.f32.mrb[11].mxu0 }
 0x665   :  { %v775_v40 = vpop.f32.mrb[12].mxu0 }
 0x666   :  { %v776_v44 = vadd.f32 %v775_v40, %v4025_v7  ;;  %v3390_v45 = vpop.f32.mrb[13].mxu0 }
 0x667   :  { %v778_v47 = vpop.f32.mrb[14].mxu0 }
 0x668   :  { %v3391_v48 = vpop.f32.mrb[15].mxu0  ;;  %v831_v50 = vsel %vm391_vm4, %v776_v44, -inf }
 0x669   :  { %832 = vmax.xlane.f32.xlu0 %v831_v50 }
 0x66b   :  { %v4127_v51 = vpop.f32.mrb[20].mxu1 }
 0x66c   :  { %v3384_v53 = vpop.f32.mrb[21].mxu1 }
 0x66d   :  { %v726_v54 = vpop.f32.mrb[22].mxu1 }
 0x66e   :  { %v3385_v55 = vpop.f32.mrb[23].mxu1 }
 0x66f   :  { %v621_v55 = vsel %vm391_vm4, %v4097_v16, 0.0 }
 0x673   :  { %v825_v57 = vpop.f32.mrb[24].mxu1 }
 0x674   :  { %v826_v58 = vadd.f32 %v825_v57, %v4030_v15  ;;  %v3396_v59 = vpop.f32.mrb[25].mxu1 }
 0x675   :  { %v828_v60 = vpop.f32.mrb[26].mxu1  ;;  %v624_v59 = vsel %vm391_vm4, %v4109_v26, 0.0 }
 0x676   :  { %v3397_v63 = vpop.f32.mrb[27].mxu1  ;;  %v834_v0 = vsel %vm391_vm4, %v826_v58, -inf }
 0x677   :  { %835 = vmax.xlane.f32.xlu1 %v834_v0 }
 0x67f   :  { %853 = vrot.lane.b32.xlu0 %v4011_v62, %s3831_s0 }
 0x683   :  { %953 = vrot.lane.b32.xlu0 %v3995_v52, %s3832_s19 }
 0x687   :  { %951 = vrot.lane.b32.xlu0 %v3995_v52, %s4711_s4 }
 0x688   :  { %1003 = vrot.lane.b32.xlu1 %v3997_v56, %s3832_s19 }
 0x68c   :  { %1001 = vrot.lane.b32.xlu1 %v3997_v56, %s4711_s4 }
 0x6f6   :  { %v833_v1 = vpop.xlane.xlu0 %832 }
 0x6f7   :  { %v837_v2 = vsub.f32 %v776_v44, %v833_v1 }
 0x6f9   :  { %v839_v3 = vmul.f32 1.442695, %v837_v2 }
 0x6fa   :  { %v854_v4 = vpop.permute.xlu0 %853 }
 0x6fb   :  { %3743 = vpow2.f32 %v839_v3  ;;  %v859_v5 = vsel %vm417_vm3, %v854_v4, 0 }
 0x6fc   :  { %3399 = vmatpush3.bf16.msra.mxu0 %v859_v5 }
 0x6fd   :  { %3410 = vmatprep.subr.bf16.mxu0 %v3824_v42 }
 0x6fe   :  { %v954_v9 = vpop.permute.xlu0 %953 }
 0x6ff   :  { %v959_v12 = vsel %vm295_vm2, %v954_v9, 0 }
 0x702   :  { %v952_v56 = vpop.permute.xlu0 %951 }
 0x704   :  { %v836_v6 = vpop.xlane.xlu1 %835 }
 0x705   :  { %v3744_v8 = vpop.eup %3743  ;;  %v838_v52 = vsub.f32 %v826_v58, %v836_v6 }
 0x706   :  { %v851_v10 = vpack.c.bf16 %v3744_v8, %v3744_v8  ;;  %v843_v57 = vsel %vm391_vm4, %v3744_v8, 0.0  ;;  %v404_v8 = vsel %vm391_vm4, %v4047_v33, 0.0 }
 0x707   :  { %v841_v11 = vmul.f32 1.442695, %v838_v52 }
 0x708   :  { %3401 = vmatmul.mubr.msk.bf16.vlgmr.msra.gmra.mrb[16].mxu0 %vm391_vm4, %v851_v10  ;;  %v1004_v14 = vpop.permute.xlu1 %1003 }
 0x709   :  { %3745 = vpow2.f32 %v841_v11  ;;  %3411 = vmatpush3.bf16.xpose.msra.mxu0 %v959_v12  ;;  %3412 = vmatprep.mubr.msk.bf16.mxu0 %vm3825_vm1, %v3824_v42  ;;  %v1009_v18 = vsel %vm295_vm2, %v1004_v14, 0  ;;  %v407_v11 = vsel %vm391_vm4, %v4061_v39, 0.0 }
 0x70a   :  { %3422 = vmatprep.subr.bf16.mxu0 %v3824_v42 }
 0x70c   :  { %v1002_v19 = vpop.permute.xlu1 %1001 }
 0x710   :  { %3413 = vmatmul.mubr.msk.bf16.vlgmr.msra.gmra.mrb[20].mxu0 %vm295_vm2, %v952_v56 }
 0x711   :  { %3424 = vmatprep.mubr.msk.bf16.mxu0 %vm3825_vm1, %v3824_v42 }
 0x713   :  { %v3746_v13 = vpop.eup %3745 }
 0x714   :  { %v852_v17 = vpack.c.bf16 %v3746_v13, %v3746_v13  ;;  %v846_v58 = vsel %vm391_vm4, %v3746_v13, 0.0 }
 0x716   :  { %3407 = vmatmul.mubr.msk.bf16.vlgmr.msra.gmra.mrb[28].mxu1 %vm391_vm4, %v852_v17 }
 0x717   :  { %3417 = vmatpush3.bf16.xpose.msra.mxu1 %v1009_v18  ;;  %3418 = vmatprep.mubr.msk.bf16.mxu1 %vm3825_vm1, %v3824_v42 }
 0x718   :  { %3428 = vmatprep.subr.bf16.mxu1 %v3824_v42 }
 0x71e   :  { %3419 = vmatmul.mubr.msk.bf16.vlgmr.msra.gmra.mrb[32].mxu1 %vm295_vm2, %v1002_v19 }
 0x71f   :  { %3430 = vmatprep.mubr.msk.bf16.mxu1 %vm3825_vm1, %v3824_v42 }
 0x7db   :  { %v4159_v20 = vpop.f32.mrb[16].mxu0 }
 0x7dc   :  { %v3402_v21 = vpop.f32.mrb[17].mxu0 }
 0x7dd   :  { %v898_v24 = vpop.f32.mrb[18].mxu0 }
 0x7de   :  { %v3403_v25 = vpop.f32.mrb[19].mxu0 }
 0x7e3   :  { %v995_v27 = vpop.f32.mrb[20].mxu0 }
 0x7e4   :  { %v996_v28 = vadd.f32 %v995_v27, %v4025_v7  ;;  %v3414_v29 = vpop.f32.mrb[21].mxu0 }
 0x7e5   :  { %v998_v30 = vpop.f32.mrb[22].mxu0  ;;  %v3683_v29 = vld [vmem:[%s4696_s6] sm:$0xff]  }
 0x7e6   :  { %v3415_v31 = vpop.f32.mrb[23].mxu0  ;;  %v1051_v34 = vsel %vm391_vm4, %v996_v28, -inf }
 0x7e7   :  { %1052 = vmax.xlane.f32.xlu0 %v1051_v34 }
 0x7e9   :  { %v4163_v35 = vpop.f32.mrb[28].mxu1 }
 0x7ea   :  { %v3408_v36 = vpop.f32.mrb[29].mxu1 }
 0x7eb   :  { %v946_v40 = vpop.f32.mrb[30].mxu1 }
 0x7ec   :  { %v3409_v44 = vpop.f32.mrb[31].mxu1  ;;  %v3686_v40 = vld [vmem:[%s4696_s6 + $0x18] sm:$0xff]  }
 0x7f1   :  { %v1045_v45 = vpop.f32.mrb[32].mxu1 }
 0x7f2   :  { %v1046_v47 = vadd.f32 %v1045_v45, %v4030_v15  ;;  %v3420_v48 = vpop.f32.mrb[33].mxu1 }
 0x7f3   :  { %v1048_v50 = vpop.f32.mrb[34].mxu1 }
 0x7f4   :  { %v3421_v53 = vpop.f32.mrb[35].mxu1  ;;  %v1054_v54 = vsel %vm391_vm4, %v1046_v47, -inf }
 0x7f5   :  { %1055 = vmax.xlane.f32.xlu1 %v1054_v54 }
 0x7fd   :  { %1073 = vrot.lane.b32.xlu0 %v4011_v62, %s4711_s4 }
 0x806   :  { %1121 = vrot.lane.b32.xlu1 %v4040_v23, %s4711_s4 }
 0x81c   :  { %622 = vadd.xlane.f32.xlu0 %v621_v55 }
 0x820   :  { %844 = vadd.xlane.f32.xlu0 %v843_v57 }
 0x824   :  { %847 = vadd.xlane.f32.xlu0 %v846_v58 }
 0x82a   :  { %625 = vadd.xlane.f32.xlu1 %v624_v59 }
 0x874   :  { %v1053_v60 = vpop.xlane.xlu0 %1052 }
 0x875   :  { %v1057_v63 = vsub.f32 %v996_v28, %v1053_v60 }
 0x877   :  { %v1059_v62 = vmul.f32 1.442695, %v1057_v63 }
 0x878   :  { %v1074_v0 = vpop.permute.xlu0 %1073 }
 0x879   :  { %3747 = vpow2.f32 %v1059_v62  ;;  %v1079_v23 = vsel %vm417_vm3, %v1074_v0, 0 }
 0x87a   :  { %3423 = vmatpush3.bf16.msra.mxu0 %v1079_v23 }
 0x87b   :  { %3434 = vmatprep.subr.bf16.mxu0 %v3824_v42 }
 0x882   :  { %v1056_v16 = vpop.xlane.xlu1 %1055 }
 0x883   :  { %v3748_v1 = vpop.eup %3747  ;;  %v1058_v2 = vsub.f32 %v1046_v47, %v1056_v16 }
 0x884   :  { %v1063_v3 = vsel %vm391_vm4, %v3748_v1, 0.0  ;;  %v1071_v4 = vpack.c.bf16 %v3748_v1, %v3748_v1 }
 0x885   :  { %v1061_v5 = vmul.f32 1.442695, %v1058_v2  ;;  %1064 = vadd.xlane.f32.xlu0 %v1063_v3 }
 0x886   :  { %v1122_v26 = vpop.permute.xlu1 %1121  ;;  %3425 = vmatmul.mubr.msk.bf16.vlgmr.msra.gmra.mrb[24].mxu0 %vm391_vm4, %v1071_v4 }
 0x887   :  { %3749 = vpow2.f32 %v1061_v5  ;;  %v1127_v6 = vsel %vm417_vm3, %v1122_v26, 0  ;;  %3442 = vmatprep.mubr.msk.bf16.mxu0 %vm3825_vm1, %v3824_v42  ;;  %3435 = vmatpush3.bf16.msra.mxu0 %v3683_v29 }
 0x888   :  { %3429 = vmatpush3.bf16.msra.mxu1 %v1127_v6  ;;  %3436 = vmatprep.subr.bf16.mxu0 %v3824_v42 }
 0x889   :  { %405 = vadd.xlane.f32.xlu0 %v404_v8  ;;  %3446 = vmatprep.subr.bf16.mxu1 %v3824_v42 }
 0x891   :  { %v3750_v9 = vpop.eup %3749 }
 0x892   :  { %v1066_v52 = vsel %vm391_vm4, %v3750_v9, 0.0  ;;  %v1072_v10 = vpack.c.bf16 %v3750_v9, %v3750_v9 }
 0x893   :  { %1067 = vadd.xlane.f32.xlu1 %v1066_v52 }
 0x894   :  { %3431 = vmatmul.mubr.msk.bf16.vlgmr.msra.gmra.mrb[36].mxu1 %vm391_vm4, %v1072_v10 }
 0x895   :  { %3454 = vmatprep.mubr.msk.bf16.mxu1 %vm3825_vm1, %v3824_v42 }
 0x897   :  { %408 = vadd.xlane.f32.xlu1 %v407_v11 }
 0x8a9   :  { %v623_v12 = vpop.xlane.xlu0 %622 }
 0x8ad   :  { %v845_v56 = vpop.xlane.xlu0 %844 }
 0x8ae   :  { %3751 = vrcp.f32 %v845_v56 }
 0x8b1   :  { %v848_v33 = vpop.xlane.xlu0 %847 }
 0x8b2   :  { %3753 = vrcp.f32 %v848_v33 }
 0x8b3   :  { %3755 = vrcp.f32 %v623_v12  ;;  %v3102_v12 = vld [vmem:[%s4697_s7] ss:$0 sm:$0xff] }
 0x8b7   :  { %v626_v13 = vpop.xlane.xlu1 %625 }
 0x8b8   :  { %3757 = vrcp.f32 %v626_v13  ;;  %v3752_v14 = vpop.eup %3751 }
 0x8b9   :  { %v949_v18 = vmul.f32 %v3752_v14, %v4159_v20  ;;  %v3684_v20 = vld [vmem:[%s4696_s6 + $0x8] sm:$0xff]  }
 0x8ba   :  { %3437 = vmatpush3.bf16.msra.mxu0 %v3684_v20 }
 0x8bb   :  { %3438 = vmatprep.subr.bf16.mxu0 %v3824_v42 }
 0x8bc   :  { %v3754_v17 = vpop.eup %3753 }
 0x8bd   :  { %v950_v19 = vmul.f32 %v3754_v17, %v4163_v35  ;;  %v3756_v24 = vpop.eup %3755 }
 0x8be   :  { %v729_v25 = vmul.f32 %v3756_v24, %v4123_v32  ;;  %v3685_v32 = vld [vmem:[%s4696_s6 + $0x10] sm:$0xff]  }
 0x8bf   :  { %v3646_v21 = vpack.i.bf16 %v950_v19, %v949_v18  ;;  %3439 = vmatpush3.bf16.msra.mxu0 %v3685_v32 }
 0x8c0   :  { %3440 = vmatprep.subr.bf16.mxu0 %v3824_v42 }
 0x8c1   :  { %3647 = vrot.lane.b32.xlu1 %v3646_v21, %s3830_s30 }
 0x8c2   :  { %v3758_v39 = vpop.eup %3757 }
 0x8c3   :  { %v730_v27 = vmul.f32 %v3758_v39, %v4127_v51  ;;  %3441 = vmatpush3.bf16.msra.mxu0 %v3686_v40 }
 0x8c4   :  { %3458 = vmatprep.subr.bf16.mxu0 %v3824_v42 }
 0x8c5   :  { %v3641_v28 = vpack.i.bf16 %v730_v27, %v729_v25 }
 0x8c7   :  { %3642 = vrot.lane.b32.xlu0 %v3641_v28, %s3832_s19 }
 0x912   :  { %v1065_v51 = vpop.xlane.xlu0 %1064 }
 0x913   :  { %3759 = vrcp.f32 %v1065_v51 }
 0x916   :  { %v406_v58 = vpop.xlane.xlu0 %405 }
 0x91d   :  { %v3760_v44 = vpop.eup %3759 }
 0x920   :  { %v1068_v31 = vpop.xlane.xlu1 %1067 }
 0x921   :  { %3761 = vrcp.f32 %v1068_v31 }
 0x922   :  { %3763 = vrcp.f32 %v406_v58 }
 0x924   :  { %v409_v59 = vpop.xlane.xlu1 %408 }
 0x925   :  { %3765 = vrcp.f32 %v409_v59 }
 0x92b   :  { %v3762_v45 = vpop.eup %3761 }
 0x92c   :  { %v3764_v63 = vpop.eup %3763 }
 0x92d   :  { %v507_v1 = vmul.f32 %v3764_v63, %v4075_v49 }
 0x92f   :  { %v3766_v62 = vpop.eup %3765 }
 0x930   :  { %v508_v2 = vmul.f32 %v3766_v62, %v4079_v61 }
 0x933   :  { %v3648_v16 = vpop.permute.xlu1 %3647 }
 0x934   :  { %v3650_v5 = vunpack.i.h.bf16 %v3648_v16  ;;  %v3649_v26 = vunpack.i.l.bf16 %v3648_v16  ;;  %v3691_v16 = vld [vmem:[%s4701_s12] sm:$0xff]  }
 0x939   :  { %v3643_v60 = vpop.permute.xlu0 %3642 }
 0x93a   :  { %v3645_v0 = vunpack.i.h.bf16 %v3643_v60  ;;  %v3644_v23 = vunpack.i.l.bf16 %v3643_v60  ;;  %v3109_v60 = vld [vmem:[%s4700_s9] ss:$0 sm:$0xff] }
 0x93c   :  { %v1195_v3 = vsel %vm295_vm2, %v507_v1, %v3644_v23  ;;  %v1196_v4 = vsel %vm295_vm2, %v508_v2, %v3645_v0  ;;  %v3692_v1 = vld [vmem:[%s4701_s12 + $0x8] sm:$0xff]   ;;  %v3693_v2 = vld [vmem:[%s4701_s12 + $0x10] sm:$0xff]  }
 0x93d   :  { %v1198_v52 = vsel %vm1197_vm5, %v1195_v3, %v3649_v26  ;;  %v1199_v10 = vsel %vm1197_vm5, %v1196_v4, %v3650_v5  ;;  %v3695_v3 = vld [vmem:[%s4701_s12 + $0x20] sm:$0xff]   ;;  %v3696_v4 = vld [vmem:[%s4701_s12 + $0x28] sm:$0xff]   ;;  %v3697_v5 = vld [vmem:[%s4701_s12 + $0x30] sm:$0xff]  }
 0x93e   :  { %v3698_v26 = vld [vmem:[%s4701_s12 + $0x38] sm:$0xff]  }
 0x959   :  { %v1115_v30 = vpop.f32.mrb[24].mxu0 }
 0x95a   :  { %v3426_v34 = vpop.f32.mrb[25].mxu0  ;;  %v1169_v48 = vmul.f32 %v3760_v44, %v1115_v30 }
 0x95b   :  { %v1118_v35 = vpop.f32.mrb[26].mxu0  ;;  %v3688_v34 = vld [vmem:[%s4698_s10 + $0x8] sm:$0xff]  }
 0x95c   :  { %v3427_v36 = vpop.f32.mrb[27].mxu0  ;;  %v3689_v35 = vld [vmem:[%s4698_s10 + $0x10] sm:$0xff]  }
 0x95d   :  { %v3690_v36 = vld [vmem:[%s4698_s10 + $0x18] sm:$0xff]  }
 0x967   :  { %v1163_v47 = vpop.f32.mrb[36].mxu1 }
 0x968   :  { %v1170_v50 = vmul.f32 %v3762_v45, %v1163_v47  ;;  %v3432_v53 = vpop.f32.mrb[37].mxu1 }
 0x969   :  { %v1166_v54 = vpop.f32.mrb[38].mxu1 }
 0x96a   :  { %v3651_v55 = vpack.i.bf16 %v1170_v50, %v1169_v48  ;;  %v3433_v57 = vpop.f32.mrb[39].mxu1 }
 0x96c   :  { %3652 = vrot.lane.b32.xlu1 %v3651_v55, %s3828_s1  ;;  %v3108_v55 = vld [vmem:[%s4699_s8] ss:$0 sm:$0xff] }
 0x9de   :  { %v3653_v6 = vpop.permute.xlu1 %3652 }
 0x9df   :  { %v3655_v8 = vunpack.i.h.bf16 %v3653_v6  ;;  %v3654_v9 = vunpack.i.l.bf16 %v3653_v6  ;;  %v3110_v6 = vld [vmem:[%s4702_s11] ss:$0 sm:$0xff] }
 0x9e1   :  { %v1202_v11 = vsel %vm1200_vm6, %v1199_v10, %v3655_v8  ;;  %v1201_v49 = vsel %vm1200_vm6, %v1198_v52, %v3654_v9 }
 0x9e2   :  { %v1203_v61 = vpack.c.bf16 %v1202_v11, %v1201_v49 }
 0x9e4   :  { %3443 = vmatmul.mubr.msk.bf16.vlgmr.msra.gmra.mrb[28].mxu0 %vm88_vm0, %v1203_v61 }
 0x9e5   :  { %3474 = vmatprep.mubr.msk.bf16.mxu0 %vm3825_vm1, %v3824_v42  ;;  %3459 = vmatpush3.bf16.msra.mxu0 %v3691_v16  ;;  %v3702_v16 = vld [vmem:[%s4717_s20 + $0x50] ss:$8 sps:$4 sm:$0xff]  }
 0x9e6   :  { %3460 = vmatprep.subr.bf16.mxu0 %v3824_v42 }
 0x9e9   :  { %3461 = vmatpush3.bf16.msra.mxu0 %v3692_v1  ;;  %v3707_v1 = vld [vmem:[%s4717_s20 + $0x64] ss:$8 sps:$4 sm:$0xff]  }
 0x9ea   :  { %3462 = vmatprep.subr.bf16.mxu0 %v3824_v42 }
 0x9ed   :  { %3463 = vmatpush3.bf16.msra.mxu0 %v3693_v2  ;;  %v3705_v2 = vld [vmem:[%s4717_s20 + $0x60] ss:$8 sps:$4 sm:$0xff]  }
 0x9ee   :  { %3464 = vmatprep.subr.bf16.mxu0 %v3824_v42 }
 0xab7   :  { %v1271_v56 = vpop.f32.mrb[28].mxu0 }
 0xab8   :  { %v1272_v33 = vadd.f32 %v3102_v12, %v1271_v56  ;;  %v3444_v13 = vpop.f32.mrb[29].mxu0 }
 0xab9   :  { %v1274_v14 = vpop.f32.mrb[30].mxu0 }
 0xaba   :  { %v1275_v17 = vadd.f32 %v3102_v12, %v1274_v14  ;;  %v3445_v18 = vpop.f32.mrb[31].mxu0  ;;  %v1278_v19 = vadd.f32 %v1272_v33, %v3970_v37 }
 0xabc   :  { %v1280_v21 = vsel %vm88_vm0, %v1278_v19, 0.0  ;;  %v1279_v24 = vadd.f32 %v1275_v17, %v3972_v38  ;;  %v3687_v38 = vld [vmem:[%s4698_s10] sm:$0xff]  }
 0xabd   :  { %1281 = vadd.xlane.f32.xlu1 %v1280_v21  ;;  %3447 = vmatpush3.bf16.msra.mxu1 %v3687_v38 }
 0xabe   :  { %v1283_v39 = vsel %vm88_vm0, %v1279_v24, 0.0  ;;  %3448 = vmatprep.subr.bf16.mxu1 %v3824_v42 }
 0xabf   :  { %1284 = vadd.xlane.f32.xlu0 %v1283_v39 }
 0xac1   :  { %3449 = vmatpush3.bf16.msra.mxu1 %v3688_v34 }
 0xac2   :  { %3450 = vmatprep.subr.bf16.mxu1 %v3824_v42 }
 0xac5   :  { %3451 = vmatpush3.bf16.msra.mxu1 %v3689_v35 }
 0xac6   :  { %3452 = vmatprep.subr.bf16.mxu1 %v3824_v42 }
 0xac9   :  { %3453 = vmatpush3.bf16.msra.mxu1 %v3690_v36 }
 0xb4a   :  { %v1282_v25 = vpop.xlane.xlu1 %1281 }
 0xb4b   :  { %v1286_v27 = vmul.f32 0.015625, %v1282_v25 }
 0xb4c   :  { %v1285_v28 = vpop.xlane.xlu0 %1284 }
 0xb4d   :  { %v1288_v29 = vsub.f32 %v1278_v19, %v1286_v27  ;;  %v1287_v20 = vmul.f32 0.015625, %v1285_v28 }
 0xb4f   :  { %v1289_v32 = vsub.f32 %v1279_v24, %v1287_v20  ;;  %v1290_v51 = vmul.f32 %v1288_v29, %v1288_v29 }
 0xb51   :  { %v1292_v30 = vsel %vm88_vm0, %v1290_v51, 0.0  ;;  %v1291_v31 = vmul.f32 %v1289_v32, %v1289_v32 }
 0xb52   :  { %1293 = vadd.xlane.f32.xlu0 %v1292_v30  ;;  %v3116_v30 = vld [vmem:[%s4703_s13] ss:$0 sm:$0xff] }
 0xb53   :  { %v1295_v37 = vsel %vm88_vm0, %v1291_v31, 0.0 }
 0xb56   :  { %1296 = vadd.xlane.f32.xlu0 %v1295_v37 }
 0xbdf   :  { %v1294_v40 = vpop.xlane.xlu0 %1293 }
 0xbe0   :  { %v1298_v44 = vmul.f32 0.015625, %v1294_v40 }
 0xbe2   :  { %v1300_v45 = vadd.f32 1e-12, %v1298_v44 }
 0xbe3   :  { %v1297_v47 = vpop.xlane.xlu0 %1296 }
 0xbe4   :  { %3767 = vrsqrt.f32 %v1300_v45  ;;  %v1299_v48 = vmul.f32 0.015625, %v1297_v47 }
 0xbe6   :  { %v1301_v50 = vadd.f32 1e-12, %v1299_v48 }
 0xbe8   :  { %3769 = vrsqrt.f32 %v1301_v50 }
 0xbee   :  { %v3768_v53 = vpop.eup %3767 }
 0xbef   :  { %v1304_v54 = vmul.f32 %v3768_v53, %v1288_v29 }
 0xbf1   :  { %v1312_v58 = vmul.f32 %v3108_v55, %v1304_v54 }
 0xbf2   :  { %v3770_v57 = vpop.eup %3769 }
 0xbf3   :  { %v1305_v59 = vmul.f32 %v3770_v57, %v1289_v32  ;;  %v4257_v62 = vadd.f32 %v3109_v60, %v1312_v58 }
 0xbf5   :  { %v1313_v63 = vmul.f32 %v3108_v55, %v1305_v59 }
 0xbf7   :  { %v4259_v0 = vadd.f32 %v3109_v60, %v1313_v63 }
 0xbf9   :  { %v1322_v23 = vpack.c.bf16 %v4259_v0, %v4257_v62 }
 0xbfb   :  { %3455 = vmatmul.mubr.msk.bf16.vlgmr.msra.gmra.mrb[40].mxu1 %vm88_vm0, %v1322_v23  ;;  %v3704_v23 = vld [vmem:[%s4717_s20 + $0x54] ss:$8 sps:$4 sm:$0xff]  }
 0xbfc   :  { %1702 = vmatprep.mubr.bf16.mxu1 %v3823_v22  ;;  %v3694_v22 = vld [vmem:[%s4701_s12 + $0x18] sm:$0xff]  }
 0xbfd   :  { %3465 = vmatpush3.bf16.msra.mxu0 %v3694_v22  ;;  %v3708_v22 = vld [vmem:[%s4717_s20 + $0x70] ss:$8 sps:$4 sm:$0xff]  }
 0xbfe   :  { %3466 = vmatprep.subr.bf16.mxu0 %v3824_v42 }
 0xc01   :  { %3467 = vmatpush3.bf16.msra.mxu0 %v3695_v3  ;;  %v3710_v3 = vld [vmem:[%s4717_s20 + $0x74] ss:$8 sps:$4 sm:$0xff]  }
 0xc02   :  { %3468 = vmatprep.subr.bf16.mxu0 %v3824_v42 }
 0xc05   :  { %3469 = vmatpush3.bf16.msra.mxu0 %v3696_v4 }
 0xc06   :  { %3470 = vmatprep.subr.bf16.mxu0 %v3824_v42 }
 0xc09   :  { %3471 = vmatpush3.bf16.msra.mxu0 %v3697_v5 }
 0xc0a   :  { %3472 = vmatprep.subr.bf16.mxu0 %v3824_v42 }
 0xc0d   :  { %3473 = vmatpush3.bf16.msra.mxu0 %v3698_v26 }
 0xc0e   :  { %3490 = vmatprep.subr.bf16.mxu0 %v3824_v42 }
 0xcce   :  { %v1390_v8 = vpop.f32.mrb[40].mxu1 }
 0xccf   :  { %v1391_v9 = vadd.f32 %v3110_v6, %v1390_v8  ;;  %v3456_v52 = vpop.f32.mrb[41].mxu1 }
 0xcd0   :  { %v1393_v10 = vpop.f32.mrb[42].mxu1 }
 0xcd1   :  { %v1399_v11 = vmul.f32 0.044715, %v1391_v9  ;;  %v1394_v49 = vadd.f32 %v3110_v6, %v1393_v10  ;;  %v3457_v61 = vpop.f32.mrb[43].mxu1  ;;  %v1397_v27 = vmul.f32 0.5, %v1391_v9  ;;  %v3125_v10 = vld [vmem:[%s4704_s14] ss:$0 sm:$0xff] }
 0xcd3   :  { %v1401_v12 = vmul.f32 %v1399_v11, %v1391_v9  ;;  %v1400_v56 = vmul.f32 0.044715, %v1394_v49  ;;  %v1398_v28 = vmul.f32 0.5, %v1394_v49 }
 0xcd5   :  { %v1403_v33 = vmul.f32 %v1401_v12, %v1391_v9  ;;  %v1402_v13 = vmul.f32 %v1400_v56, %v1394_v49  ;;  %v3126_v56 = vld [vmem:[%s4705_s15] ss:$0 sm:$0xff] }
 0xcd7   :  { %v1405_v14 = vadd.f32 %v1403_v33, %v1391_v9  ;;  %v1404_v17 = vmul.f32 %v1402_v13, %v1394_v49 }
 0xcd9   :  { %v1407_v18 = vmul.f32 0.7978846, %v1405_v14  ;;  %v1406_v19 = vadd.f32 %v1404_v17, %v1394_v49 }
 0xcdb   :  { %3771 = vtanh.f32 %v1407_v18  ;;  %v1408_v21 = vmul.f32 0.7978846, %v1406_v19  ;;  %v3135_v18 = vld [vmem:[%s4694_s5 + $0x2] sm:$0x3]  ;;  %s4719_s5 = smov 80  }
 0xcdc   :  { %v1620_v19 = vrot.slane %v3135_v18, %v3982_v43 }
 0xcdd   :  { %3773 = vtanh.f32 %v1408_v21  ;;  %v1624_v21 = vrot.slane %v3135_v18, %v188_v46 }
 0xce5   :  { %v3772_v24 = vpop.eup %3771 }
 0xce6   :  { %v1411_v39 = vadd.f32 1.0, %v3772_v24 }
 0xce7   :  { %v3774_v25 = vpop.eup %3773 }
 0xce8   :  { %v1412_v29 = vadd.f32 1.0, %v3774_v25  ;;  %v1413_v20 = vmul.f32 %v1411_v39, %v1397_v27 }
 0xcea   :  { %v1414_v32 = vmul.f32 %v1412_v29, %v1398_v28 }
 0xcec   :  { %v1415_v51 = vpack.c.bf16 %v1414_v32, %v1413_v20 }
 0xcee   :  { %3475 = vmatmul.mubr.bf16.vlgmr.msra.gmra.mrb[32].mxu0 %v1415_v51 }
 0xcef   :  { %3492 = vmatprep.mubr.msk.bf16.mxu0 %vm3825_vm1, %v3824_v42 }
 0xdc1   :  { %v1504_v31 = vpop.f32.mrb[32].mxu0 }
 0xdc2   :  { %v1505_v37 = vadd.f32 %v3116_v30, %v1504_v31  ;;  %v3476_v38 = vpop.f32.mrb[33].mxu0 }
 0xdc3   :  { %v1507_v34 = vpop.f32.mrb[34].mxu0 }
 0xdc4   :  { %v1508_v35 = vadd.f32 %v3116_v30, %v1507_v34  ;;  %v3477_v36 = vpop.f32.mrb[35].mxu0  ;;  %v1511_v40 = vadd.f32 %v1505_v37, %v4257_v62  ;;  %v3701_v62 = vld [vmem:[%s4717_s20 + $0x44] ss:$8 sps:$4 sm:$0xff]  }
 0xdc5   :  { %1670 = vmatprep.subr.bf16.mxu1 %v3701_v62 }
 0xdc6   :  { %v1513_v44 = vsel %vm88_vm0, %v1511_v40, 0.0  ;;  %v1512_v45 = vadd.f32 %v1508_v35, %v4259_v0  ;;  %v3699_v0 = vld [vmem:[%s4717_s20 + $0x40] ss:$8 sps:$4 sm:$0xff]  }
 0xdc7   :  { %1514 = vadd.xlane.f32.xlu1 %v1513_v44  ;;  %1671 = vmatpush1.bf16.msra.mxu1 %v3699_v0 }
 0xdc8   :  { %v1516_v47 = vsel %vm88_vm0, %v1512_v45, 0.0  ;;  %1672 = vmatprep.subr.bf16.mxu1 %v3704_v23 }
 0xdc9   :  { %1517 = vadd.xlane.f32.xlu0 %v1516_v47 }
 0xdcb   :  { %1673 = vmatpush1.bf16.msra.mxu1 %v3702_v16 }
 0xdcc   :  { %1674 = vmatprep.subr.bf16.mxu1 %v3707_v1 }
 0xdcf   :  { %1675 = vmatpush1.bf16.msra.mxu1 %v3705_v2 }
 0xdd0   :  { %1676 = vmatprep.subr.bf16.mxu1 %v3710_v3 }
 0xdd3   :  { %1677 = vmatpush1.bf16.msra.mxu1 %v3708_v22 }
 0xdd4   :  { %3478 = vmatprep.subr.bf16.mxu1 %v3824_v42 }
 0xe54   :  { %v1515_v48 = vpop.xlane.xlu1 %1514 }
 0xe55   :  { %v1519_v50 = vmul.f32 0.015625, %v1515_v48 }
 0xe56   :  { %v1518_v53 = vpop.xlane.xlu0 %1517 }
 0xe57   :  { %v1521_v54 = vsub.f32 %v1511_v40, %v1519_v50  ;;  %v1520_v55 = vmul.f32 0.015625, %v1518_v53 }
 0xe59   :  { %v1522_v57 = vsub.f32 %v1512_v45, %v1520_v55  ;;  %v1523_v58 = vmul.f32 %v1521_v54, %v1521_v54 }
 0xe5b   :  { %v1525_v59 = vsel %vm88_vm0, %v1523_v58, 0.0  ;;  %v1524_v60 = vmul.f32 %v1522_v57, %v1522_v57 }
 0xe5c   :  { %1526 = vadd.xlane.f32.xlu1 %v1525_v59 }
 0xe5d   :  { %v1528_v63 = vsel %vm88_vm0, %v1524_v60, 0.0 }
 0xe5e   :  { %1529 = vadd.xlane.f32.xlu0 %v1528_v63 }
 0xee9   :  { %v1527_v4 = vpop.xlane.xlu1 %1526 }
 0xeea   :  { %v1531_v5 = vmul.f32 0.015625, %v1527_v4 }
 0xeeb   :  { %v1530_v26 = vpop.xlane.xlu0 %1529 }
 0xeec   :  { %v1533_v6 = vadd.f32 1e-12, %v1531_v5  ;;  %v1532_v8 = vmul.f32 0.015625, %v1530_v26 }
 0xeee   :  { %3775 = vrsqrt.f32 %v1533_v6  ;;  %v1534_v9 = vadd.f32 1e-12, %v1532_v8 }
 0xef0   :  { %3777 = vrsqrt.f32 %v1534_v9 }
 0xef8   :  { %v3776_v52 = vpop.eup %3775 }
 0xef9   :  { %v1537_v11 = vmul.f32 %v3776_v52, %v1521_v54 }
 0xefa   :  { %v3778_v49 = vpop.eup %3777 }
 0xefb   :  { %v1545_v61 = vmul.f32 %v3125_v10, %v1537_v11  ;;  %v1538_v12 = vmul.f32 %v3778_v49, %v1522_v57 }
 0xefd   :  { %v1546_v33 = vmul.f32 %v3125_v10, %v1538_v12  ;;  %v4342_v13 = vadd.f32 %v3126_v56, %v1545_v61 }
 0xeff   :  { %v4344_v14 = vadd.f32 %v3126_v56, %v1546_v33 }
 0xf01   :  { %v1615_v17 = vpack.c.bf16 %v4344_v14, %v4342_v13 }
 0xf03   :  { %3183 = vmatmul.mubr.msk.bf16.vlgmr.msra.gmra.mrb[44].mxu1 %vm88_vm0, %v1615_v17 }
 0xf04   :  { %3480 = vmatprep.mubr.msk.bf16.mxu1 %vm3825_vm1, %v3824_v42 }
 0xfd6   :  { %v1704_v24 = vpop.f32.mrb[44].mxu1 }
 0xfd7   :  { %v1705_v39 = vadd.f32 %v1704_v24, %v1620_v19  ;;  %v1706_v25 = vpop.f32.mrb[45].mxu1 }
 0xfd8   :  { %v1707_v27 = vadd.f32 %v1706_v25, %v1624_v21  ;;  %v1708_v28 = vpop.f32.mrb[46].mxu1 }
 0xfd9   :  { %v4357_v29 = vpack.c.bf16 %v1705_v39, %v1705_v39  ;;  %v1709_v20 = vadd.f32 %v1708_v28, %v1620_v19  ;;  %v1710_v32 = vpop.f32.mrb[47].mxu1 }
 0xfda   :  { %v4359_v51 = vpack.c.bf16 %v1707_v27, %v1707_v27  ;;  %v1711_v30 = vadd.f32 %v1710_v32, %v1624_v21 }
 0xfdb   :  { %v4361_v31 = vpack.c.bf16 %v1709_v20, %v1709_v20  ;;  %1718 = vrot.lane.b32.xlu1 %v4357_v29, %s3826_s26 }
 0xfdc   :  { %v1841_v41 = vsel %vm417_vm3, %v4359_v51, 0  ;;  %v4380_v34 = vpack.c.bf16 %v1711_v30, %v1711_v30 }
 0xfdd   :  { %1767 = vrot.lane.b32.xlu0 %v4361_v31, %s3826_s26  ;;  %3491 = vmatpush3.bf16.msra.mxu0 %v1841_v41 }
 0xfde   :  { %3502 = vmatprep.subr.bf16.mxu0 %v3824_v42  ;;  %v1887_v35 = vsel %vm417_vm3, %v4380_v34, 0 }
 0xfdf   :  { %1933 = vrot.lane.b32.xlu1 %v4357_v29, %s3828_s1 }
0x104d   :  { %v1719_v43 = vpop.permute.xlu1 %1718 }
0x104e   :  { %v1724_v46 = vsel %vm295_vm2, %v1719_v43, 0 }
0x104f   :  { %3479 = vmatpush3.bf16.xpose.msra.mxu1 %v1724_v46  ;;  %v1768_v37 = vpop.permute.xlu0 %1767 }
0x1050   :  { %3484 = vmatprep.subr.bf16.mxu1 %v3824_v42  ;;  %v1773_v38 = vsel %vm295_vm2, %v1768_v37, 0 }
0x1051   :  { %v1934_v59 = vpop.permute.xlu1 %1933 }
0x1052   :  { %v1939_v3 = vsel %vm295_vm2, %v1934_v59, 0 }
0x1056   :  { %3481 = vmatmul.mubr.msk.bf16.vlgmr.msra.gmra.mrb[48].mxu1 %vm295_vm2, %v4357_v29 }
0x1057   :  { %3485 = vmatpush3.bf16.xpose.msra.mxu1 %v1773_v38  ;;  %3486 = vmatprep.mubr.msk.bf16.mxu1 %vm3825_vm1, %v3824_v42 }
0x1058   :  { %3496 = vmatprep.subr.bf16.mxu1 %v3824_v42 }
0x105e   :  { %3487 = vmatmul.mubr.msk.bf16.vlgmr.msra.gmra.mrb[52].mxu1 %vm295_vm2, %v4361_v31 }
0x105f   :  { %3497 = vmatpush3.bf16.msra.mxu1 %v1887_v35  ;;  %3498 = vmatprep.mubr.msk.bf16.mxu1 %vm3825_vm1, %v3824_v42 }
0x1060   :  { %3508 = vmatprep.subr.bf16.mxu1 %v3824_v42 }
0x1129   :  { %v1760_v36 = vpop.f32.mrb[48].mxu1 }
0x112a   :  { %v1761_v40 = vadd.f32 %v1760_v36, %v4025_v7  ;;  %v3482_v44 = vpop.f32.mrb[49].mxu1 }
0x112b   :  { %v1763_v45 = vpop.f32.mrb[50].mxu1 }
0x112c   :  { %v3483_v47 = vpop.f32.mrb[51].mxu1  ;;  %v1815_v48 = vsel %vm391_vm4, %v1761_v40, -inf }
0x112d   :  { %1816 = vmax.xlane.f32.xlu1 %v1815_v48 }
0x1131   :  { %v1809_v50 = vpop.f32.mrb[52].mxu1 }
0x1132   :  { %v1810_v53 = vadd.f32 %v1809_v50, %v4030_v15  ;;  %v3488_v54 = vpop.f32.mrb[53].mxu1 }
0x1133   :  { %v1812_v55 = vpop.f32.mrb[54].mxu1 }
0x1134   :  { %v3489_v57 = vpop.f32.mrb[55].mxu1  ;;  %v1818_v58 = vsel %vm391_vm4, %v1810_v53, -inf }
0x1135   :  { %1819 = vmax.xlane.f32.xlu0 %v1818_v58 }
0x113e   :  { %1931 = vrot.lane.b32.xlu1 %v4357_v29, %s3829_s29 }
0x1142   :  { %1981 = vrot.lane.b32.xlu1 %v4361_v31, %s3829_s29 }
0x1146   :  { %2103 = vrot.lane.b32.xlu1 %v4380_v34, %s3829_s29 }
0x114b   :  { %1983 = vrot.lane.b32.xlu0 %v4361_v31, %s3828_s1 }
0x114f   :  { %2054 = vrot.lane.b32.xlu0 %v4359_v51, %s3829_s29 }
0x11ba   :  { %v1817_v60 = vpop.xlane.xlu1 %1816 }
0x11bb   :  { %v1821_v63 = vsub.f32 %v1761_v40, %v1817_v60 }
0x11bd   :  { %v1823_v62 = vmul.f32 1.442695, %v1821_v63 }
0x11be   :  { %v1932_v4 = vpop.permute.xlu1 %1931 }
0x11bf   :  { %3779 = vpow2.f32 %v1823_v62 }
0x11c2   :  { %v1820_v0 = vpop.xlane.xlu0 %1819  ;;  %v1982_v8 = vpop.permute.xlu1 %1981 }
0x11c3   :  { %v1822_v23 = vsub.f32 %v1810_v53, %v1820_v0 }
0x11c5   :  { %v1825_v16 = vmul.f32 1.442695, %v1822_v23 }
0x11c6   :  { %v1984_v22 = vpop.permute.xlu0 %1983  ;;  %v2104_v10 = vpop.permute.xlu1 %2103 }
0x11c7   :  { %3781 = vpow2.f32 %v1825_v16  ;;  %v1989_v9 = vsel %vm295_vm2, %v1984_v22, 0  ;;  %v2109_v11 = vsel %vm417_vm3, %v2104_v10, 0 }
0x11c9   :  { %v4403_v1 = vpop.eup %3779 }
0x11ca   :  { %v1835_v2 = vpack.c.bf16 %v4403_v1, %v4403_v1  ;;  %v2055_v26 = vpop.permute.xlu0 %2054 }
0x11cb   :  { %v2060_v52 = vsel %vm417_vm3, %v2055_v26, 0 }
0x11cc   :  { %3493 = vmatmul.mubr.msk.bf16.vlgmr.msra.gmra.mrb[36].mxu0 %vm391_vm4, %v1835_v2 }
0x11cd   :  { %3503 = vmatpush3.bf16.xpose.msra.mxu0 %v1939_v3  ;;  %3504 = vmatprep.mubr.msk.bf16.mxu0 %vm3825_vm1, %v3824_v42 }
0x11ce   :  { %3514 = vmatprep.subr.bf16.mxu0 %v3824_v42 }
0x11d1   :  { %v4412_v5 = vpop.eup %3781 }
0x11d2   :  { %v1836_v6 = vpack.c.bf16 %v4412_v5, %v4412_v5 }
0x11d4   :  { %3499 = vmatmul.mubr.msk.bf16.vlgmr.msra.gmra.mrb[56].mxu1 %vm391_vm4, %v1836_v6  ;;  %3505 = vmatmul.mubr.msk.bf16.vlgmr.msra.gmra.mrb[40].mxu0 %vm295_vm2, %v1932_v4 }
0x11d5   :  { %3509 = vmatpush3.bf16.xpose.msra.mxu1 %v1989_v9  ;;  %3515 = vmatpush3.bf16.msra.mxu0 %v2060_v52 }
0x11d6   :  { %3510 = vmatprep.mubr.msk.bf16.mxu1 %vm3825_vm1, %v3824_v42  ;;  %3520 = vmatprep.subr.bf16.mxu1 %v3824_v42 }
0x11d7   :  { %3516 = vmatprep.mubr.msk.bf16.mxu0 %vm3825_vm1, %v3824_v42  ;;  %3526 = vmatprep.subr.bf16.mxu0 %v3824_v42 }
0x11dc   :  { %3511 = vmatmul.mubr.msk.bf16.vlgmr.msra.gmra.mrb[60].mxu1 %vm295_vm2, %v1982_v8 }
0x11dd   :  { %3521 = vmatpush3.bf16.msra.mxu1 %v2109_v11  ;;  %3522 = vmatprep.mubr.msk.bf16.mxu1 %vm3825_vm1, %v3824_v42 }
0x11de   :  { %3532 = vmatprep.subr.bf16.mxu1 %v3824_v42 }
0x129f   :  { %v4431_v49 = vpop.f32.mrb[36].mxu0 }
0x12a0   :  { %v3494_v61 = vpop.f32.mrb[37].mxu0 }
0x12a1   :  { %v1880_v12 = vpop.f32.mrb[38].mxu0 }
0x12a2   :  { %v3495_v56 = vpop.f32.mrb[39].mxu0 }
0x12a7   :  { %v4433_v33 = vpop.f32.mrb[56].mxu1  ;;  %v1975_v17 = vpop.f32.mrb[40].mxu0 }
0x12a8   :  { %v1976_v18 = vadd.f32 %v1975_v17, %v4025_v7  ;;  %v3500_v19 = vpop.f32.mrb[57].mxu1  ;;  %v3506_v21 = vpop.f32.mrb[41].mxu0 }
0x12a9   :  { %v1926_v24 = vpop.f32.mrb[58].mxu1  ;;  %v1978_v39 = vpop.f32.mrb[42].mxu0 }
0x12aa   :  { %v3501_v25 = vpop.f32.mrb[59].mxu1  ;;  %v3507_v27 = vpop.f32.mrb[43].mxu0  ;;  %v2031_v28 = vsel %vm391_vm4, %v1976_v18, -inf }
0x12ab   :  { %2032 = vmax.xlane.f32.xlu1 %v2031_v28 }
0x12af   :  { %v2025_v20 = vpop.f32.mrb[60].mxu1 }
0x12b0   :  { %v2026_v32 = vadd.f32 %v2025_v20, %v4030_v15  ;;  %v3512_v30 = vpop.f32.mrb[61].mxu1 }
0x12b1   :  { %v2028_v41 = vpop.f32.mrb[62].mxu1 }
0x12b2   :  { %v3513_v43 = vpop.f32.mrb[63].mxu1  ;;  %v2034_v46 = vsel %vm391_vm4, %v2026_v32, -inf }
0x12b3   :  { %2035 = vmax.xlane.f32.xlu0 %v2034_v46 }
0x12bc   :  { %2155 = vrot.lane.b32.xlu1 %v4357_v29, %s3830_s30 }
0x12c0   :  { %2153 = vrot.lane.b32.xlu1 %v4357_v29, %s3831_s0 }
0x12c4   :  { %2323 = vrot.lane.b32.xlu1 %v4380_v34, %s3831_s0 }
0x12c9   :  { %2205 = vrot.lane.b32.xlu0 %v4361_v31, %s3830_s30 }
0x12cd   :  { %2203 = vrot.lane.b32.xlu0 %v4361_v31, %s3831_s0 }
0x12d1   :  { %2275 = vrot.lane.b32.xlu0 %v4359_v51, %s3831_s0 }
0x1338   :  { %v2033_v37 = vpop.xlane.xlu1 %2032 }
0x1339   :  { %v2037_v38 = vsub.f32 %v1976_v18, %v2033_v37 }
0x133b   :  { %v2039_v35 = vmul.f32 1.442695, %v2037_v38 }
0x133c   :  { %v2156_v48 = vpop.permute.xlu1 %2155 }
0x133d   :  { %3783 = vpow2.f32 %v2039_v35  ;;  %v2161_v54 = vsel %vm295_vm2, %v2156_v48, 0 }
0x1340   :  { %v2036_v36 = vpop.xlane.xlu0 %2035  ;;  %v2154_v59 = vpop.permute.xlu1 %2153 }
0x1341   :  { %v2038_v40 = vsub.f32 %v2026_v32, %v2036_v36 }
0x1343   :  { %v2041_v44 = vmul.f32 1.442695, %v2038_v40 }
0x1344   :  { %v2206_v45 = vpop.permute.xlu0 %2205  ;;  %v2324_v62 = vpop.permute.xlu1 %2323 }
0x1345   :  { %3785 = vpow2.f32 %v2041_v44  ;;  %v2211_v60 = vsel %vm295_vm2, %v2206_v45, 0  ;;  %v2329_v0 = vsel %vm417_vm3, %v2324_v62, 0 }
0x1347   :  { %v4451_v47 = vpop.eup %3783 }
0x1348   :  { %v2051_v50 = vpack.c.bf16 %v4451_v47, %v4451_v47  ;;  %v2204_v53 = vpop.permute.xlu0 %2203 }
0x134a   :  { %3517 = vmatmul.mubr.msk.bf16.vlgmr.msra.gmra.mrb[44].mxu0 %vm391_vm4, %v2051_v50 }
0x134b   :  { %3527 = vmatpush3.bf16.xpose.msra.mxu0 %v2161_v54  ;;  %3528 = vmatprep.mubr.msk.bf16.mxu0 %vm3825_vm1, %v3824_v42 }
0x134c   :  { %3538 = vmatprep.subr.bf16.mxu0 %v3824_v42  ;;  %v2276_v57 = vpop.permute.xlu0 %2275 }
0x134d   :  { %v2281_v63 = vsel %vm417_vm3, %v2276_v57, 0 }
0x134f   :  { %v4460_v55 = vpop.eup %3785 }
0x1350   :  { %v2052_v58 = vpack.c.bf16 %v4460_v55, %v4460_v55 }
0x1352   :  { %3523 = vmatmul.mubr.msk.bf16.vlgmr.msra.gmra.mrb[64].mxu1 %vm391_vm4, %v2052_v58  ;;  %3529 = vmatmul.mubr.msk.bf16.vlgmr.msra.gmra.mrb[48].mxu0 %vm295_vm2, %v2154_v59 }
0x1353   :  { %3533 = vmatpush3.bf16.xpose.msra.mxu1 %v2211_v60  ;;  %3539 = vmatpush3.bf16.msra.mxu0 %v2281_v63 }
0x1354   :  { %3534 = vmatprep.mubr.msk.bf16.mxu1 %vm3825_vm1, %v3824_v42  ;;  %3544 = vmatprep.subr.bf16.mxu1 %v3824_v42 }
0x1355   :  { %3540 = vmatprep.mubr.msk.bf16.mxu0 %vm3825_vm1, %v3824_v42  ;;  %3550 = vmatprep.subr.bf16.mxu0 %v3824_v42 }
0x135a   :  { %3535 = vmatmul.mubr.msk.bf16.vlgmr.msra.gmra.mrb[68].mxu1 %vm295_vm2, %v2204_v53 }
0x135b   :  { %3545 = vmatpush3.bf16.msra.mxu1 %v2329_v0  ;;  %3546 = vmatprep.mubr.msk.bf16.mxu1 %vm3825_vm1, %v3824_v42 }
0x135c   :  { %3556 = vmatprep.subr.bf16.mxu1 %v3824_v42 }
0x141d   :  { %v4479_v23 = vpop.f32.mrb[44].mxu0 }
0x141e   :  { %v3518_v16 = vpop.f32.mrb[45].mxu0 }
0x141f   :  { %v2099_v2 = vpop.f32.mrb[46].mxu0 }
0x1420   :  { %v3519_v22 = vpop.f32.mrb[47].mxu0 }
0x1425   :  { %v4481_v3 = vpop.f32.mrb[64].mxu1  ;;  %v2197_v4 = vpop.f32.mrb[48].mxu0 }
0x1426   :  { %v2198_v26 = vadd.f32 %v2197_v4, %v4025_v7  ;;  %v3524_v6 = vpop.f32.mrb[65].mxu1  ;;  %v3530_v8 = vpop.f32.mrb[49].mxu0 }
0x1427   :  { %v2148_v9 = vpop.f32.mrb[66].mxu1  ;;  %v2200_v52 = vpop.f32.mrb[50].mxu0  ;;  %v2046_v6 = vsel %vm391_vm4, %v4460_v55, 0.0 }
0x1428   :  { %v3525_v10 = vpop.f32.mrb[67].mxu1  ;;  %v3531_v11 = vpop.f32.mrb[51].mxu0  ;;  %v2253_v61 = vsel %vm391_vm4, %v2198_v26, -inf }
0x1429   :  { %2254 = vmax.xlane.f32.xlu1 %v2253_v61 }
0x142d   :  { %v2247_v12 = vpop.f32.mrb[68].mxu1 }
0x142e   :  { %v2248_v56 = vadd.f32 %v2247_v12, %v4030_v15  ;;  %v3536_v17 = vpop.f32.mrb[69].mxu1 }
0x142f   :  { %v2250_v18 = vpop.f32.mrb[70].mxu1 }
0x1430   :  { %v3537_v19 = vpop.f32.mrb[71].mxu1  ;;  %v2256_v21 = vsel %vm391_vm4, %v2248_v56, -inf }
0x1431   :  { %2257 = vmax.xlane.f32.xlu0 %v2256_v21  ;;  %v1827_v19 = vsel %vm391_vm4, %v4403_v1, 0.0 }
0x143a   :  { %2375 = vrot.lane.b32.xlu1 %v4357_v29, %s3832_s19 }
0x143e   :  { %2373 = vrot.lane.b32.xlu1 %v4357_v29, %s4719_s5 }
0x1447   :  { %2425 = vrot.lane.b32.xlu0 %v4361_v31, %s3832_s19 }
0x144b   :  { %2423 = vrot.lane.b32.xlu0 %v4361_v31, %s4719_s5 }
0x14b6   :  { %v2255_v24 = vpop.xlane.xlu1 %2254 }
0x14b7   :  { %v2259_v39 = vsub.f32 %v2198_v26, %v2255_v24 }
0x14b9   :  { %v2261_v25 = vmul.f32 1.442695, %v2259_v39 }
0x14ba   :  { %v2376_v30 = vpop.permute.xlu1 %2375 }
0x14bb   :  { %3787 = vpow2.f32 %v2261_v25  ;;  %v2381_v43 = vsel %vm295_vm2, %v2376_v30, 0  ;;  %v1830_v25 = vsel %vm391_vm4, %v4412_v5, 0.0 }
0x14be   :  { %v2258_v27 = vpop.xlane.xlu0 %2257  ;;  %v2374_v37 = vpop.permute.xlu1 %2373 }
0x14bf   :  { %v2260_v28 = vsub.f32 %v2248_v56, %v2258_v27 }
0x14c1   :  { %v2263_v20 = vmul.f32 1.442695, %v2260_v28 }
0x14c2   :  { %v2426_v31 = vpop.permute.xlu0 %2425 }
0x14c3   :  { %3789 = vpow2.f32 %v2263_v20  ;;  %v2431_v38 = vsel %vm295_vm2, %v2426_v31, 0 }
0x14c5   :  { %v3788_v32 = vpop.eup %3787 }
0x14c6   :  { %v2273_v41 = vpack.c.bf16 %v3788_v32, %v3788_v32  ;;  %v2424_v35 = vpop.permute.xlu0 %2423 }
0x14c8   :  { %3541 = vmatmul.mubr.msk.bf16.vlgmr.msra.gmra.mrb[52].mxu0 %vm391_vm4, %v2273_v41 }
0x14c9   :  { %3551 = vmatpush3.bf16.xpose.msra.mxu0 %v2381_v43  ;;  %3552 = vmatprep.mubr.msk.bf16.mxu0 %vm3825_vm1, %v3824_v42 }
0x14ca   :  { %3562 = vmatprep.subr.bf16.mxu0 %v3824_v42 }
0x14cd   :  { %v3790_v29 = vpop.eup %3789 }
0x14ce   :  { %v2274_v46 = vpack.c.bf16 %v3790_v29, %v3790_v29  ;;  %v2268_v8 = vsel %vm391_vm4, %v3790_v29, 0.0 }
0x14d0   :  { %3547 = vmatmul.mubr.msk.bf16.vlgmr.msra.gmra.mrb[72].mxu1 %vm391_vm4, %v2274_v46  ;;  %3553 = vmatmul.mubr.msk.bf16.vlgmr.msra.gmra.mrb[56].mxu0 %vm295_vm2, %v2374_v37 }
0x14d1   :  { %3557 = vmatpush3.bf16.xpose.msra.mxu1 %v2431_v38  ;;  %3558 = vmatprep.mubr.msk.bf16.mxu1 %vm3825_vm1, %v3824_v42 }
0x14d2   :  { %3568 = vmatprep.subr.bf16.mxu1 %v3824_v42  ;;  %3564 = vmatprep.mubr.msk.bf16.mxu0 %vm3825_vm1, %v3824_v42 }
0x14d8   :  { %3559 = vmatmul.mubr.msk.bf16.vlgmr.msra.gmra.mrb[76].mxu1 %vm295_vm2, %v2424_v35  ;;  %v3711_v35 = vld [vmem:[%s4696_s6 + $0x20] sm:$0xff]  }
0x14d9   :  { %3570 = vmatprep.mubr.msk.bf16.mxu1 %vm3825_vm1, %v3824_v42 }
0x159b   :  { %v4511_v36 = vpop.f32.mrb[52].mxu0 }
0x159c   :  { %v3542_v40 = vpop.f32.mrb[53].mxu0 }
0x159d   :  { %v2320_v44 = vpop.f32.mrb[54].mxu0 }
0x159e   :  { %v3543_v45 = vpop.f32.mrb[55].mxu0 }
0x15a3   :  { %v4513_v48 = vpop.f32.mrb[72].mxu1  ;;  %v2417_v50 = vpop.f32.mrb[56].mxu0 }
0x15a4   :  { %v2418_v53 = vadd.f32 %v2417_v50, %v4025_v7  ;;  %v3548_v54 = vpop.f32.mrb[73].mxu1  ;;  %v3554_v57 = vpop.f32.mrb[57].mxu0  ;;  %v2043_v7 = vsel %vm391_vm4, %v4451_v47, 0.0 }
0x15a5   :  { %v2368_v58 = vpop.f32.mrb[74].mxu1  ;;  %v2420_v59 = vpop.f32.mrb[58].mxu0 }
0x15a6   :  { %v3549_v60 = vpop.f32.mrb[75].mxu1  ;;  %v3555_v63 = vpop.f32.mrb[59].mxu0  ;;  %v2473_v62 = vsel %vm391_vm4, %v2418_v53, -inf }
0x15a7   :  { %2474 = vmax.xlane.f32.xlu1 %v2473_v62 }
0x15ab   :  { %v2467_v0 = vpop.f32.mrb[76].mxu1 }
0x15ac   :  { %v2468_v16 = vadd.f32 %v2467_v0, %v4030_v15  ;;  %v3560_v2 = vpop.f32.mrb[77].mxu1  ;;  %v2265_v15 = vsel %vm391_vm4, %v3788_v32, 0.0 }
0x15ad   :  { %v2470_v22 = vpop.f32.mrb[78].mxu1 }
0x15ae   :  { %v3561_v4 = vpop.f32.mrb[79].mxu1  ;;  %v2476_v26 = vsel %vm391_vm4, %v2468_v16, -inf }
0x15af   :  { %2477 = vmax.xlane.f32.xlu0 %v2476_v26 }
0x15b8   :  { %2543 = vrot.lane.b32.xlu1 %v4380_v34, %s4719_s5 }
0x15c5   :  { %2495 = vrot.lane.b32.xlu0 %v4359_v51, %s4719_s5 }
0x15dc   :  { %2044 = vadd.xlane.f32.xlu1 %v2043_v7 }
0x15e4   :  { %2047 = vadd.xlane.f32.xlu0 %v2046_v6 }
0x15e8   :  { %2266 = vadd.xlane.f32.xlu0 %v2265_v15 }
0x15ec   :  { %2269 = vadd.xlane.f32.xlu0 %v2268_v8 }
0x1634   :  { %v2475_v9 = vpop.xlane.xlu1 %2474 }
0x1635   :  { %v2479_v52 = vsub.f32 %v2418_v53, %v2475_v9 }
0x1637   :  { %v2481_v34 = vmul.f32 1.442695, %v2479_v52 }
0x1638   :  { %v2544_v10 = vpop.permute.xlu1 %2543 }
0x1639   :  { %3791 = vpow2.f32 %v2481_v34  ;;  %v2549_v51 = vsel %vm417_vm3, %v2544_v10, 0 }
0x163a   :  { %3569 = vmatpush3.bf16.msra.mxu1 %v2549_v51 }
0x163b   :  { %3586 = vmatprep.subr.bf16.mxu1 %v3824_v42 }
0x163c   :  { %v2478_v47 = vpop.xlane.xlu0 %2477 }
0x163d   :  { %v2480_v11 = vsub.f32 %v2468_v16, %v2478_v47 }
0x163f   :  { %v2483_v55 = vmul.f32 1.442695, %v2480_v11 }
0x1640   :  { %v2496_v61 = vpop.permute.xlu0 %2495 }
0x1641   :  { %3793 = vpow2.f32 %v2483_v55  ;;  %v2501_v12 = vsel %vm417_vm3, %v2496_v61, 0 }
0x1642   :  { %3563 = vmatpush3.bf16.msra.mxu0 %v2501_v12 }
0x1643   :  { %v3792_v56 = vpop.eup %3791  ;;  %3574 = vmatprep.subr.bf16.mxu0 %v3824_v42 }
0x1644   :  { %v2485_v17 = vsel %vm391_vm4, %v3792_v56, 0.0  ;;  %v2493_v18 = vpack.c.bf16 %v3792_v56, %v3792_v56 }
0x1645   :  { %2486 = vadd.xlane.f32.xlu1 %v2485_v17 }
0x1646   :  { %3565 = vmatmul.mubr.msk.bf16.vlgmr.msra.gmra.mrb[60].mxu0 %vm391_vm4, %v2493_v18 }
0x1647   :  { %3582 = vmatprep.mubr.msk.bf16.mxu0 %vm3825_vm1, %v3824_v42  ;;  %3575 = vmatpush3.bf16.msra.mxu0 %v3711_v35  ;;  %v3716_v35 = vld [vmem:[%s4698_s10 + $0x28] sm:$0xff]  }
0x1648   :  { %3576 = vmatprep.subr.bf16.mxu0 %v3824_v42 }
0x1649   :  { %1828 = vadd.xlane.f32.xlu1 %v1827_v19 }
0x164b   :  { %v3794_v21 = vpop.eup %3793 }
0x164c   :  { %v2488_v24 = vsel %vm391_vm4, %v3794_v21, 0.0  ;;  %v2494_v39 = vpack.c.bf16 %v3794_v21, %v3794_v21 }
0x164d   :  { %2489 = vadd.xlane.f32.xlu0 %v2488_v24 }
0x164e   :  { %3571 = vmatmul.mubr.msk.bf16.vlgmr.msra.gmra.mrb[80].mxu1 %vm391_vm4, %v2494_v39 }
0x164f   :  { %3594 = vmatprep.mubr.msk.bf16.mxu1 %vm3825_vm1, %v3824_v42 }
0x1651   :  { %1831 = vadd.xlane.f32.xlu0 %v1830_v25 }
0x1669   :  { %v2045_v27 = vpop.xlane.xlu1 %2044 }
0x166a   :  { %3795 = vrcp.f32 %v2045_v27 }
0x1671   :  { %v2048_v28 = vpop.xlane.xlu0 %2047 }
0x1672   :  { %3797 = vrcp.f32 %v2048_v28 }
0x1674   :  { %v3796_v32 = vpop.eup %3795 }
0x1675   :  { %v2267_v1 = vpop.xlane.xlu0 %2266  ;;  %v2151_v41 = vmul.f32 %v3796_v32, %v4479_v23  ;;  %v3712_v23 = vld [vmem:[%s4696_s6 + $0x28] sm:$0xff]  }
0x1676   :  { %3799 = vrcp.f32 %v2267_v1  ;;  %3577 = vmatpush3.bf16.msra.mxu0 %v3712_v23  ;;  %v3717_v23 = vld [vmem:[%s4698_s10 + $0x30] sm:$0xff]  }
0x1677   :  { %3578 = vmatprep.subr.bf16.mxu0 %v3824_v42 }
0x1679   :  { %v2270_v20 = vpop.xlane.xlu0 %2269 }
0x167a   :  { %3801 = vrcp.f32 %v2270_v20 }
0x167c   :  { %v3798_v30 = vpop.eup %3797 }
0x167d   :  { %v2152_v43 = vmul.f32 %v3798_v30, %v4481_v3  ;;  %v3713_v3 = vld [vmem:[%s4696_s6 + $0x30] sm:$0xff]  }
0x167e   :  { %3579 = vmatpush3.bf16.msra.mxu0 %v3713_v3  ;;  %v3718_v3 = vld [vmem:[%s4698_s10 + $0x38] sm:$0xff]  }
0x167f   :  { %v3656_v29 = vpack.i.bf16 %v2152_v43, %v2151_v41  ;;  %3580 = vmatprep.subr.bf16.mxu0 %v3824_v42 }
0x1680   :  { %v3800_v31 = vpop.eup %3799 }
0x1681   :  { %3657 = vrot.lane.b32.xlu1 %v3656_v29, %s3832_s19  ;;  %v2371_v46 = vmul.f32 %v3800_v31, %v4511_v36 }
0x1684   :  { %v3802_v5 = vpop.eup %3801 }
0x1685   :  { %v2372_v37 = vmul.f32 %v3802_v5, %v4513_v48  ;;  %v3714_v48 = vld [vmem:[%s4696_s6 + $0x38] sm:$0xff]  }
0x1686   :  { %3581 = vmatpush3.bf16.msra.mxu0 %v3714_v48 }
0x1687   :  { %v3661_v38 = vpack.i.bf16 %v2372_v37, %v2371_v46  ;;  %3598 = vmatprep.subr.bf16.mxu0 %v3824_v42 }
0x1689   :  { %3662 = vrot.lane.b32.xlu0 %v3661_v38, %s3830_s30 }
0x16d2   :  { %v2487_v36 = vpop.xlane.xlu1 %2486 }
0x16d3   :  { %3803 = vrcp.f32 %v2487_v36 }
0x16d6   :  { %v1829_v2 = vpop.xlane.xlu1 %1828 }
0x16da   :  { %v2490_v40 = vpop.xlane.xlu0 %2489 }
0x16db   :  { %3805 = vrcp.f32 %v2490_v40 }
0x16dc   :  { %3807 = vrcp.f32 %v1829_v2 }
0x16dd   :  { %v3804_v54 = vpop.eup %3803 }
0x16de   :  { %v1832_v22 = vpop.xlane.xlu0 %1831 }
0x16df   :  { %3809 = vrcp.f32 %v1832_v22  ;;  %v3719_v22 = vld [vmem:[%s4701_s12 + $0x40] sm:$0xff]  }
0x16e5   :  { %v3806_v57 = vpop.eup %3805 }
0x16e6   :  { %v3808_v26 = vpop.eup %3807 }
0x16e7   :  { %v1929_v34 = vmul.f32 %v3808_v26, %v4431_v49  ;;  %v3200_v49 = vld [vmem:[%s4697_s7 + $0x1] ss:$0 sm:$0xff]  ;;  %v3721_v26 = vld [vmem:[%s4701_s12 + $0x50] sm:$0xff]  }
0x16e9   :  { %v3810_v6 = vpop.eup %3809 }
0x16ea   :  { %v1930_v10 = vmul.f32 %v3810_v6, %v4433_v33  ;;  %v3723_v6 = vld [vmem:[%s4701_s12 + $0x60] sm:$0xff]  }
0x16f3   :  { %v3658_v4 = vpop.permute.xlu1 %3657 }
0x16f4   :  { %v3660_v15 = vunpack.i.h.bf16 %v3658_v4  ;;  %v3659_v8 = vunpack.i.l.bf16 %v3658_v4  ;;  %v3720_v4 = vld [vmem:[%s4701_s12 + $0x48] sm:$0xff]  }
0x16f6   :  { %v2618_v47 = vsel %vm295_vm2, %v1930_v10, %v3660_v15  ;;  %v2617_v11 = vsel %vm295_vm2, %v1929_v34, %v3659_v8  ;;  %v3724_v15 = vld [vmem:[%s4701_s12 + $0x68] sm:$0xff]   ;;  %v3725_v8 = vld [vmem:[%s4701_s12 + $0x70] sm:$0xff]  }
0x16fb   :  { %v3663_v7 = vpop.permute.xlu0 %3662 }
0x16fc   :  { %v3665_v9 = vunpack.i.h.bf16 %v3663_v7  ;;  %v3664_v52 = vunpack.i.l.bf16 %v3663_v7  ;;  %v3722_v7 = vld [vmem:[%s4701_s12 + $0x58] sm:$0xff]  }
0x16fe   :  { %v2619_v12 = vsel %vm1197_vm5, %v2617_v11, %v3664_v52  ;;  %v2620_v56 = vsel %vm1197_vm5, %v2618_v47, %v3665_v9  ;;  %v3726_v9 = vld [vmem:[%s4701_s12 + $0x78] sm:$0xff]   ;;  %v3208_v52 = vld [vmem:[%s4702_s11 + $0x1] ss:$0 sm:$0xff] }
0x1719   :  { %v2537_v44 = vpop.f32.mrb[60].mxu0 }
0x171a   :  { %v3566_v45 = vpop.f32.mrb[61].mxu0  ;;  %v2591_v59 = vmul.f32 %v3804_v54, %v2537_v44  ;;  %v3206_v54 = vld [vmem:[%s4699_s8 + $0x1] ss:$0 sm:$0xff] }
0x171b   :  { %v2540_v50 = vpop.f32.mrb[62].mxu0 }
0x171c   :  { %v3567_v53 = vpop.f32.mrb[63].mxu0 }
0x1721   :  { %v2585_v58 = vpop.f32.mrb[80].mxu1 }
0x1722   :  { %v2592_v60 = vmul.f32 %v3806_v57, %v2585_v58  ;;  %v3572_v63 = vpop.f32.mrb[81].mxu1 }
0x1723   :  { %v2588_v62 = vpop.f32.mrb[82].mxu1  ;;  %v3207_v63 = vld [vmem:[%s4700_s9 + $0x1] ss:$0 sm:$0xff] }
0x1724   :  { %v3666_v0 = vpack.i.bf16 %v2592_v60, %v2591_v59  ;;  %v3573_v16 = vpop.f32.mrb[83].mxu1 }
0x1726   :  { %3667 = vrot.lane.b32.xlu1 %v3666_v0, %s3828_s1 }
0x1798   :  { %v3668_v51 = vpop.permute.xlu1 %3667 }
0x1799   :  { %v3670_v55 = vunpack.i.h.bf16 %v3668_v51  ;;  %v3669_v61 = vunpack.i.l.bf16 %v3668_v51 }
0x179b   :  { %v2622_v17 = vsel %vm1200_vm6, %v2620_v56, %v3670_v55  ;;  %v2621_v18 = vsel %vm1200_vm6, %v2619_v12, %v3669_v61 }
0x179c   :  { %v2623_v19 = vpack.c.bf16 %v2622_v17, %v2621_v18 }
0x179e   :  { %3583 = vmatmul.mubr.msk.bf16.vlgmr.msra.gmra.mrb[64].mxu0 %vm88_vm0, %v2623_v19 }
0x179f   :  { %3614 = vmatprep.mubr.msk.bf16.mxu0 %vm3825_vm1, %v3824_v42  ;;  %3599 = vmatpush3.bf16.msra.mxu0 %v3719_v22 }
0x17a0   :  { %3600 = vmatprep.subr.bf16.mxu0 %v3824_v42 }
0x17a3   :  { %3601 = vmatpush3.bf16.msra.mxu0 %v3720_v4 }
0x17a4   :  { %3602 = vmatprep.subr.bf16.mxu0 %v3824_v42 }
0x17a7   :  { %3603 = vmatpush3.bf16.msra.mxu0 %v3721_v26 }
0x17a8   :  { %3604 = vmatprep.subr.bf16.mxu0 %v3824_v42 }
0x17ab   :  { %3605 = vmatpush3.bf16.msra.mxu0 %v3722_v7  ;;  %v3223_v7 = vld [vmem:[%s4704_s14 + $0x1] ss:$0 sm:$0xff] }
0x17ac   :  { %3606 = vmatprep.subr.bf16.mxu0 %v3824_v42 }
0x17af   :  { %3607 = vmatpush3.bf16.msra.mxu0 %v3723_v6 }
0x17b0   :  { %3608 = vmatprep.subr.bf16.mxu0 %v3824_v42 }
0x17b3   :  { %3609 = vmatpush3.bf16.msra.mxu0 %v3724_v15 }
0x17b4   :  { %3610 = vmatprep.subr.bf16.mxu0 %v3824_v42 }
0x17b7   :  { %3611 = vmatpush3.bf16.msra.mxu0 %v3725_v8 }
0x17b8   :  { %3612 = vmatprep.subr.bf16.mxu0 %v3824_v42 }
0x17bb   :  { %3613 = vmatpush3.bf16.msra.mxu0 %v3726_v9 }
0x1871   :  { %v2691_v33 = vpop.f32.mrb[64].mxu0 }
0x1872   :  { %v2692_v21 = vadd.f32 %v3200_v49, %v2691_v33  ;;  %v3584_v24 = vpop.f32.mrb[65].mxu0 }
0x1873   :  { %v2694_v39 = vpop.f32.mrb[66].mxu0 }
0x1874   :  { %v2695_v25 = vadd.f32 %v3200_v49, %v2694_v39  ;;  %v3585_v27 = vpop.f32.mrb[67].mxu0  ;;  %v2698_v28 = vadd.f32 %v2692_v21, %v4342_v13 }
0x1876   :  { %v2700_v1 = vsel %vm88_vm0, %v2698_v28, 0.0  ;;  %v2699_v20 = vadd.f32 %v2695_v25, %v4344_v14  ;;  %v3715_v14 = vld [vmem:[%s4698_s10 + $0x20] sm:$0xff]  }
0x1877   :  { %2701 = vadd.xlane.f32.xlu1 %v2700_v1  ;;  %3587 = vmatpush3.bf16.msra.mxu1 %v3715_v14 }
0x1878   :  { %v2703_v32 = vsel %vm88_vm0, %v2699_v20, 0.0  ;;  %3588 = vmatprep.subr.bf16.mxu1 %v3824_v42 }
0x1879   :  { %2704 = vadd.xlane.f32.xlu0 %v2703_v32 }
0x187b   :  { %3589 = vmatpush3.bf16.msra.mxu1 %v3716_v35 }
0x187c   :  { %3590 = vmatprep.subr.bf16.mxu1 %v3824_v42 }
0x187f   :  { %3591 = vmatpush3.bf16.msra.mxu1 %v3717_v23 }
0x1880   :  { %3592 = vmatprep.subr.bf16.mxu1 %v3824_v42 }
0x1883   :  { %3593 = vmatpush3.bf16.msra.mxu1 %v3718_v3 }
0x1884   :  { %3618 = vmatprep.subr.bf16.mxu1 %v3824_v42 }
0x1904   :  { %v2702_v30 = vpop.xlane.xlu1 %2701 }
0x1905   :  { %v2706_v41 = vmul.f32 0.015625, %v2702_v30 }
0x1906   :  { %v2705_v43 = vpop.xlane.xlu0 %2704 }
0x1907   :  { %v2708_v29 = vsub.f32 %v2698_v28, %v2706_v41  ;;  %v2707_v31 = vmul.f32 0.015625, %v2705_v43  ;;  %v3214_v43 = vld [vmem:[%s4703_s13 + $0x1] ss:$0 sm:$0xff] }
0x1909   :  { %v2709_v5 = vsub.f32 %v2699_v20, %v2707_v31  ;;  %v2710_v46 = vmul.f32 %v2708_v29, %v2708_v29 }
0x190b   :  { %v2712_v37 = vsel %vm88_vm0, %v2710_v46, 0.0  ;;  %v2711_v38 = vmul.f32 %v2709_v5, %v2709_v5 }
0x190c   :  { %2713 = vadd.xlane.f32.xlu0 %v2712_v37 }
0x190d   :  { %v2715_v13 = vsel %vm88_vm0, %v2711_v38, 0.0 }
0x190e   :  { %2716 = vadd.xlane.f32.xlu1 %v2715_v13 }
0x1999   :  { %v2714_v36 = vpop.xlane.xlu0 %2713 }
0x199a   :  { %v2718_v40 = vmul.f32 0.015625, %v2714_v36 }
0x199b   :  { %v2717_v44 = vpop.xlane.xlu1 %2716 }
0x199c   :  { %v2720_v45 = vadd.f32 1e-12, %v2718_v40  ;;  %v2719_v48 = vmul.f32 0.015625, %v2717_v44 }
0x199e   :  { %3811 = vrsqrt.f32 %v2720_v45  ;;  %v2721_v50 = vadd.f32 1e-12, %v2719_v48 }
0x19a0   :  { %3813 = vrsqrt.f32 %v2721_v50 }
0x19a8   :  { %v3812_v53 = vpop.eup %3811 }
0x19a9   :  { %v2724_v57 = vmul.f32 %v3812_v53, %v2708_v29 }
0x19aa   :  { %v3814_v58 = vpop.eup %3813 }
0x19ab   :  { %v2732_v59 = vmul.f32 %v3206_v54, %v2724_v57  ;;  %v2725_v60 = vmul.f32 %v3814_v58, %v2709_v5  ;;  %v3727_v58 = vld [vmem:[%s4706_s16] sm:$0xff]  }
0x19ad   :  { %v2733_v62 = vmul.f32 %v3206_v54, %v2725_v60  ;;  %v4610_v0 = vadd.f32 %v3207_v63, %v2732_v59  ;;  %v3728_v59 = vld [vmem:[%s4706_s16 + $0x8] sm:$0xff]   ;;  %v3729_v60 = vld [vmem:[%s4706_s16 + $0x10] sm:$0xff]  }
0x19af   :  { %v4612_v16 = vadd.f32 %v3207_v63, %v2733_v62  ;;  %v3730_v63 = vld [vmem:[%s4706_s16 + $0x18] sm:$0xff]  }
0x19b1   :  { %v2742_v2 = vpack.c.bf16 %v4612_v16, %v4610_v0 }
0x19b3   :  { %3595 = vmatmul.mubr.msk.bf16.vlgmr.msra.gmra.mrb[84].mxu1 %vm88_vm0, %v2742_v2 }
0x19b4   :  { %3626 = vmatprep.mubr.msk.bf16.mxu1 %vm3825_vm1, %v3824_v42  ;;  %3619 = vmatpush3.bf16.msra.mxu1 %v3727_v58 }
0x19b5   :  { %3620 = vmatprep.subr.bf16.mxu1 %v3824_v42 }
0x19b8   :  { %3621 = vmatpush3.bf16.msra.mxu1 %v3728_v59 }
0x19b9   :  { %3622 = vmatprep.subr.bf16.mxu1 %v3824_v42 }
0x19bc   :  { %3623 = vmatpush3.bf16.msra.mxu1 %v3729_v60 }
0x19bd   :  { %3624 = vmatprep.subr.bf16.mxu1 %v3824_v42  ;;  %v3224_v42 = vld [vmem:[%s4705_s15 + $0x1] ss:$0 sm:$0xff] }
0x19c0   :  { %3625 = vmatpush3.bf16.msra.mxu1 %v3730_v63 }
0x1a86   :  { %v2810_v34 = vpop.f32.mrb[84].mxu1 }
0x1a87   :  { %v2811_v10 = vadd.f32 %v3208_v52, %v2810_v34  ;;  %v3596_v51 = vpop.f32.mrb[85].mxu1 }
0x1a88   :  { %v2813_v47 = vpop.f32.mrb[86].mxu1 }
0x1a89   :  { %v2819_v11 = vmul.f32 0.044715, %v2811_v10  ;;  %v2814_v55 = vadd.f32 %v3208_v52, %v2813_v47  ;;  %v3597_v61 = vpop.f32.mrb[87].mxu1  ;;  %v2817_v28 = vmul.f32 0.5, %v2811_v10 }
0x1a8b   :  { %v2821_v12 = vmul.f32 %v2819_v11, %v2811_v10  ;;  %v2820_v56 = vmul.f32 0.044715, %v2814_v55  ;;  %v2818_v1 = vmul.f32 0.5, %v2814_v55 }
0x1a8d   :  { %v2823_v17 = vmul.f32 %v2821_v12, %v2811_v10  ;;  %v2822_v18 = vmul.f32 %v2820_v56, %v2814_v55 }
0x1a8f   :  { %v2825_v19 = vadd.f32 %v2823_v17, %v2811_v10  ;;  %v2824_v49 = vmul.f32 %v2822_v18, %v2814_v55  ;;  %v3225_v17 = vld [vmem:[%s4707_s17] ss:$0 sm:$0xff] }
0x1a91   :  { %v2827_v33 = vmul.f32 0.7978846, %v2825_v19  ;;  %v2826_v21 = vadd.f32 %v2824_v49, %v2814_v55 }
0x1a93   :  { %3815 = vtanh.f32 %v2827_v33  ;;  %v2828_v24 = vmul.f32 0.7978846, %v2826_v21 }
0x1a95   :  { %3817 = vtanh.f32 %v2828_v24 }
0x1a9d   :  { %v3816_v39 = vpop.eup %3815 }
0x1a9e   :  { %v2831_v25 = vadd.f32 1.0, %v3816_v39 }
0x1a9f   :  { %v3818_v27 = vpop.eup %3817 }
0x1aa0   :  { %v2832_v20 = vadd.f32 1.0, %v3818_v27  ;;  %v2833_v32 = vmul.f32 %v2831_v25, %v2817_v28 }
0x1aa2   :  { %v2834_v30 = vmul.f32 %v2832_v20, %v2818_v1 }
0x1aa4   :  { %v2835_v41 = vpack.c.bf16 %v2834_v30, %v2833_v32 }
0x1aa6   :  { %3615 = vmatmul.mubr.bf16.vlgmr.msra.gmra.mrb[68].mxu0 %v2835_v41 }
0x1b79   :  { %v2924_v29 = vpop.f32.mrb[68].mxu0 }
0x1b7a   :  { %v2925_v31 = vadd.f32 %v3214_v43, %v2924_v29  ;;  %v3616_v5 = vpop.f32.mrb[69].mxu0 }
0x1b7b   :  { %v2927_v46 = vpop.f32.mrb[70].mxu0 }
0x1b7c   :  { %v2928_v37 = vadd.f32 %v3214_v43, %v2927_v46  ;;  %v3617_v38 = vpop.f32.mrb[71].mxu0  ;;  %v2931_v13 = vadd.f32 %v2925_v31, %v4610_v0 }
0x1b7e   :  { %v2933_v14 = vsel %vm88_vm0, %v2931_v13, 0.0  ;;  %v2932_v35 = vadd.f32 %v2928_v37, %v4612_v16 }
0x1b7f   :  { %2934 = vadd.xlane.f32.xlu1 %v2933_v14 }
0x1b80   :  { %v2936_v23 = vsel %vm88_vm0, %v2932_v35, 0.0 }
0x1b81   :  { %2937 = vadd.xlane.f32.xlu0 %v2936_v23 }
0x1c0c   :  { %v2935_v3 = vpop.xlane.xlu1 %2934 }
0x1c0d   :  { %v2939_v36 = vmul.f32 0.015625, %v2935_v3 }
0x1c0e   :  { %v2938_v40 = vpop.xlane.xlu0 %2937 }
0x1c0f   :  { %v2941_v44 = vsub.f32 %v2931_v13, %v2939_v36  ;;  %v2940_v45 = vmul.f32 0.015625, %v2938_v40 }
0x1c11   :  { %v2942_v48 = vsub.f32 %v2932_v35, %v2940_v45  ;;  %v2943_v50 = vmul.f32 %v2941_v44, %v2941_v44 }
0x1c13   :  { %v2945_v53 = vsel %vm88_vm0, %v2943_v50, 0.0  ;;  %v2944_v54 = vmul.f32 %v2942_v48, %v2942_v48 }
0x1c14   :  { %2946 = vadd.xlane.f32.xlu1 %v2945_v53 }
0x1c15   :  { %v2948_v57 = vsel %vm88_vm0, %v2944_v54, 0.0 }
0x1c16   :  { %2949 = vadd.xlane.f32.xlu0 %v2948_v57 }
0x1ca1   :  { %v2947_v62 = vpop.xlane.xlu1 %2946 }
0x1ca2   :  { %v2951_v0 = vmul.f32 0.015625, %v2947_v62 }
0x1ca3   :  { %v2950_v16 = vpop.xlane.xlu0 %2949 }
0x1ca4   :  { %v2953_v2 = vadd.f32 1e-12, %v2951_v0  ;;  %v2952_v22 = vmul.f32 0.015625, %v2950_v16 }
0x1ca6   :  { %3819 = vrsqrt.f32 %v2953_v2  ;;  %v2954_v4 = vadd.f32 1e-12, %v2952_v22 }
0x1ca8   :  { %3821 = vrsqrt.f32 %v2954_v4 }
0x1cb0   :  { %v3820_v26 = vpop.eup %3819 }
0x1cb1   :  { %v2957_v6 = vmul.f32 %v3820_v26, %v2941_v44 }
0x1cb2   :  { %v3822_v15 = vpop.eup %3821 }
0x1cb3   :  { %v2965_v8 = vmul.f32 %v3223_v7, %v2957_v6  ;;  %v2958_v9 = vmul.f32 %v3822_v15, %v2942_v48 }
0x1cb5   :  { %v2973_v52 = vadd.f32 %v3224_v42, %v2965_v8  ;;  %v2966_v34 = vmul.f32 %v3223_v7, %v2958_v9 }
0x1cb7   :  { %v2974_v10 = vadd.f32 %v3224_v42, %v2966_v34  ;;  %v2975_v51 = vpack.c.bf16 %v2973_v52, %v2973_v52 }
0x1cb9   :  { %v2976_v47 = vpack.c.bf16 %v2974_v10, %v2974_v10  ;;  %v2994_v55 = vunpack.c.l.b16 %v2975_v51 }
0x1cbb   :  { %v2995_v11 = vunpack.c.l.b16 %v2976_v47 }
0x1cbd   :  { %v2996_v61 = vrot.slane %v2995_v11, 7 }
0x1cbf   :  { %v2998_v12 = vsel %vm2997_vm7, %v2996_v61, %v2994_v55 }
0x1cc0   :  { %v2999_v56 = vpack.c.b16 %v2998_v12, %v2998_v12 }
0x1cc2   :  { %3627 = vmatmul.mubr.msk.bf16.vlgmr.msra.gmra.mrb[88].mxu1 %vm88_vm0, %v2999_v56 }
0x1d95   :  { %v3061_v18 = vpop.f32.mrb[88].mxu1 }
0x1d96   :  { %v3062_v19 = vadd.f32 %v3225_v17, %v3061_v18  ;;  %v3628_v49 = vpop.f32.mrb[89].mxu1 }
0x1d97   :  { %v3064_v33 = vpop.f32.mrb[90].mxu1 }
0x1d98   :  { %v3068_v21 = vsel %vm3067_vm8, %v3062_v19, 0.0  ;;  %v3629_v24 = vpop.f32.mrb[91].mxu1 }
0x1d99   :  { %3069 = vst [vmem:[%s4708_s18] sm:$0xff] %v3068_v21 }

</bundles_post_ra>
